<compile_context>
chip_gen: v7x
topology: tpu7x:2x2x1
jax: 0.10.0
libtpu: 0.0.40
codegen_flags: <defaults>
</compile_context>

<pallas_src>
import math

import jax
import jax.numpy as jnp
from jax.experimental import pallas as pl
from jax.experimental.pallas import tpu as pltpu


# ConvBranch configuration: (in_ch, out_ch, kernel, stride); dropout omitted
# (identity in eval mode).
_BRANCH_CFG = ((None, 16, 6, 4), (16, 32, 5, 2), (32, 64, 4, 2),
               (64, 128, 3, 2), (128, 256, 2, 2))

_FRONT = 8      # rows reserved at the front of every activation buffer (>= max pad, sublane aligned)
_BT_MAX = 8     # max batch samples per grid step


def _round_up(x, m):
    return (x + m - 1) // m * m


def _plan(in_channel, length):
    """Static per-layer geometry (all Python ints)."""
    plan = []
    l_in = length
    cin_p = in_channel                              # layer-0 channels kept exact (tiny)
    for i, (cin, cout, k, s) in enumerate(_BRANCH_CFG):
        cin = in_channel if i == 0 else cin
        pad = k // 2
        l_out = (l_in + 2 * pad - k) // s + 1       # PyTorch Conv1d formula
        lp_out = _round_up(l_out, 8)                # sublane-aligned M
        cout_p = _round_up(cout, 128)               # lane-dense output channels
        interior = l_in if i == 0 else plan[i - 1]["lp_out"]   # rows rewritten per sample
        base = _FRONT - pad                         # first buffer row read by tap 0
        rows = _round_up(max(base + (k - 1) + (lp_out - 1) * s + 1,
                             _FRONT + interior), 8)
        plan.append(dict(cin=cin, cout=cout, k=k, s=s, pad=pad,
                         l_in=l_in, l_out=l_out, lp_out=lp_out,
                         cin_p=cin_p, cout_p=cout_p, rows=rows,
                         interior=interior, base=base))
        l_in = l_out
        cin_p = cout_p                              # next layer reads the 128-lane padded output
    return plan


# ------------------------------ Pallas kernel ------------------------------ #
def _make_branch_kernel(plan, batch_tile, length):
    n_layers = len(plan)

    def kernel(*refs):
        x_ref = refs[0]                                   # (Bt, L, C_in)  f32
        wb = refs[1:1 + 2 * n_layers]                     # per layer: w (K, Cout_p) bf16, b (1, Cout_p) f32
        o_ref = refs[1 + 2 * n_layers]                    # (Bt, lp_out, 256) f32
        bufs = refs[2 + 2 * n_layers:2 + 3 * n_layers]    # per-layer padded input buffers (VMEM)
        lhs0 = refs[2 + 3 * n_layers]                     # (lp_out0, k0*cin0) f32 scratch for layer-0 LHS

        # Zero only the conv-padding (front) rows and the tail rows once per
        # grid step; the interior rows are fully rewritten for every sample.
        # (Done every step, NOT under program_id==0, so it stays correct when
        #  the grid is sharded across TensorCores.)
        for i, lp in enumerate(plan):
            buf = bufs[i]
            buf[pl.ds(0, _FRONT), :] = jnp.zeros((_FRONT, lp["cin_p"]), jnp.float32)
            tail = lp["rows"] - _FRONT - lp["interior"]
            if tail > 0:
                buf[pl.ds(_FRONT + lp["interior"], tail), :] = (
                    jnp.zeros((tail, lp["cin_p"]), jnp.float32))

        # Row-validity masks (hoisted out of the sample loop).
        masks = [
            jax.lax.broadcasted_iota(jnp.int32, (lp["lp_out"], 1), 0) < lp["l_out"]
            for lp in plan
        ]

        for b in range(batch_tile):
            # Place the real input rows inside layer-0's zero-padded buffer.
            bufs[0][pl.ds(_FRONT, length), :] = x_ref[b]

            for i, lp in enumerate(plan):
                src = bufs[i]
                k, s, lp_out, cin_p = lp["k"], lp["s"], lp["lp_out"], lp["cin_p"]
                base = lp["base"]

                # conv as ONE matmul: K-concatenate the k strided tap slices.
                #   lhs[l, kk*cin_p + c] = src[base + l*s + kk, c]
                taps = [src[pl.ds(base + kk, lp_out, stride=s), :] for kk in range(k)]
                if i == 0:
                    # narrow (4-wide) pieces: assemble through a tiny VMEM
                    # scratch instead of an unaligned lane concat.
                    for kk in range(k):
                        lhs0[:, kk * cin_p:(kk + 1) * cin_p] = taps[kk]
                    lhs = lhs0[...]
                else:
                    # 128-lane-aligned pieces: free vreg concat.
                    lhs = jnp.concatenate(taps, axis=-1)

                acc = jnp.dot(lhs.astype(jnp.bfloat16), wb[2 * i][...],
                              preferred_element_type=jnp.float32)
                y = jnp.maximum(acc + wb[2 * i + 1][...], 0.0)   # folded BN bias + ReLU (f32)
                # zero the garbage rows (l >= l_out) so the next buffer's
                # right-padding stays exactly zero and stores remain unmasked.
                y = jnp.where(masks[i], y, 0.0)

                if i + 1 < n_layers:
                    bufs[i + 1][pl.ds(_FRONT, lp_out), :] = y
                else:
                    o_ref[b] = y.astype(o_ref.dtype)

    return kernel


# ------------------------------ host wrapper ------------------------------- #
def _fold_bn(p, eps=1e-5):
    scale = p["gamma"] / jnp.sqrt(p["var"] + eps)
    w_f = p["w"] * scale[:, None, None]                # (C_out, C_in, K)
    b_f = (p["b"] - p["mean"]) * scale + p["beta"]     # (C_out,)
    return w_f, b_f


@jax.jit
def conv_branch_forward(x, params):
    """x: (N, C_in, L) f32 -> (N, 256, L_out) f32 (eval-mode forward)."""
    N, C_in, L = x.shape
    plan = _plan(C_in, L)
    last = plan[-1]

    # Batch blocking: amortize per-grid-step overhead, but keep >= 2 grid
    # steps when possible so both v7x TensorCores get work.
    bt = max(1, min(_BT_MAX, -(-N // 2)))
    n_pad = -(-N // bt) * bt
    grid = n_pad // bt

    # Fold BN, pad channels, reshape each weight to (k*cin_p, cout_p), cast bf16.
    flat_wb = []
    for p, lp in zip(params, plan):
        w_f, b_f = _fold_bn(p)
        w_t = jnp.transpose(w_f, (2, 1, 0))            # (K, C_in, C_out)
        w_pad = jnp.zeros((lp["k"], lp["cin_p"], lp["cout_p"]), jnp.float32)
        w_pad = w_pad.at[:, :lp["cin"], :lp["cout"]].set(w_t)
        w_pad = w_pad.reshape(lp["k"] * lp["cin_p"], lp["cout_p"]).astype(jnp.bfloat16)
        b_pad = jnp.zeros((1, lp["cout_p"]), jnp.float32)
        b_pad = b_pad.at[0, :lp["cout"]].set(b_f)
        flat_wb += [w_pad, b_pad]

    # Input: NCL -> channels-last (N, L, C_in); no channel inflation, only
    # batch padding to a multiple of the batch tile.
    x_cl = jnp.transpose(x, (0, 2, 1))
    if n_pad != N:
        x_cl = jnp.pad(x_cl, ((0, n_pad - N), (0, 0), (0, 0)))

    in_specs = [pl.BlockSpec((bt, L, C_in), lambda i: (i, 0, 0))]
    for lp in plan:
        in_specs.append(pl.BlockSpec((lp["k"] * lp["cin_p"], lp["cout_p"]),
                                     lambda i: (0, 0)))
        in_specs.append(pl.BlockSpec((1, lp["cout_p"]), lambda i: (0, 0)))
    out_specs = pl.BlockSpec((bt, last["lp_out"], last["cout_p"]),
                             lambda i: (i, 0, 0))

    scratch_shapes = [pltpu.VMEM((lp["rows"], lp["cin_p"]), jnp.float32)
                      for lp in plan]
    scratch_shapes.append(
        pltpu.VMEM((plan[0]["lp_out"], plan[0]["k"] * plan[0]["cin_p"]),
                   jnp.float32))

    # Advisory cost estimate using REAL (unpadded) counts.
    flops = 2 * N * sum(lp["l_out"] * lp["cin"] * lp["cout"] * lp["k"] for lp in plan)
    bytes_accessed = (4 * N * (C_in * L + last["l_out"] * last["cout"])
                      + sum(2 * lp["k"] * lp["cin"] * lp["cout"] + 4 * lp["cout"]
                            for lp in plan))

    out = pl.pallas_call(
        _make_branch_kernel(plan, bt, L),
        out_shape=jax.ShapeDtypeStruct((n_pad, last["lp_out"], last["cout_p"]),
                                       jnp.float32),
        grid=(grid,),
        in_specs=in_specs,
        out_specs=out_specs,
        scratch_shapes=scratch_shapes,
        compiler_params=pltpu.CompilerParams(
            dimension_semantics=("parallel",)),
        cost_estimate=pl.CostEstimate(flops=flops, transcendentals=0,
                                      bytes_accessed=bytes_accessed),
    )(x_cl, *flat_wb)

    # Valid rows / channels, single transpose back to PyTorch NCL layout.
    out = out[:N, :last["l_out"], :last["cout"]]
    return jnp.transpose(out, (0, 2, 1))


# ---------------------------- parameter init -------------------------------- #
def init_conv1d_block(key, in_ch, out_ch, k):
    kw, kb, kg, kbeta, km, kv = jax.random.split(key, 6)
    bound = 1.0 / math.sqrt(in_ch * k)
    return {
        "w": jax.random.uniform(kw, (out_ch, in_ch, k), jnp.float32, -bound, bound),
        "b": jax.random.uniform(kb, (out_ch,), jnp.float32, -bound, bound),
        "gamma": 1.0 + 0.1 * jax.random.normal(kg, (out_ch,), jnp.float32),
        "beta": 0.1 * jax.random.normal(kbeta, (out_ch,), jnp.float32),
        "mean": 0.1 * jax.random.normal(km, (out_ch,), jnp.float32),
        "var": jnp.abs(1.0 + 0.1 * jax.random.normal(kv, (out_ch,), jnp.float32)),
    }


def make_conv_branch_params(key, in_channel):
    keys = jax.random.split(key, len(_BRANCH_CFG))
    params = []
    for kk, (cin, cout, k, s) in zip(keys, _BRANCH_CFG):
        cin = in_channel if cin is None else cin
        params.append(init_conv1d_block(kk, cin, cout, k))
    return params


def _reference_forward(x, params, matmul_dtype=jnp.float32):
    """Pure-XLA reference (eval-mode Conv1d + BN + ReLU chain).

    matmul_dtype=bfloat16 mirrors the kernel's numerics (bf16 MXU operands,
    f32 accumulation, f32 epilogue)."""
    precision = jax.lax.Precision.HIGHEST if matmul_dtype == jnp.float32 else None
    for p, (_, _, k, s) in zip(params, _BRANCH_CFG):
        w_f, b_f = _fold_bn(p)
        y = jax.lax.conv_general_dilated(
            x.astype(matmul_dtype), w_f.astype(matmul_dtype),
            window_strides=(s,), padding=[(k // 2, k // 2)],
            dimension_numbers=("NCH", "OIH", "NCH"),
            preferred_element_type=jnp.float32,
            precision=precision)
        x = jnp.maximum(y + b_f[None, :, None], 0.0)
    return x


# ---------------------------------- main ------------------------------------ #
if __name__ == "__main__":
    key = jax.random.PRNGKey(0)
    k_x, k_p = jax.random.split(key)

    N, C_in, L = 2, 4, 256
    x = jax.random.normal(k_x, (N, C_in, L), jnp.float32)
    params = make_conv_branch_params(k_p, C_in)

    out = jax.block_until_ready(conv_branch_forward(x, params))

    # Expected output shape: (2, 256, 5)   [L: 256 -> 65 -> 33 -> 17 -> 9 -> 5]
    assert out.shape == (2, 256, 5), out.shape

    # Tight check vs a reference with matching numerics (bf16 operands, f32 accum).
    ref_bf16 = jax.block_until_ready(_reference_forward(x, params, jnp.bfloat16))
    err_bf16 = float(jnp.max(jnp.abs(out - ref_bf16)))
    assert jnp.allclose(out, ref_bf16, atol=2e-3, rtol=2e-3), err_bf16

    # Sanity check vs the all-f32 reference (difference = bf16 operand rounding).
    ref_f32 = jax.block_until_ready(_reference_forward(x, params, jnp.float32))
    err_f32 = float(jnp.max(jnp.abs(out - ref_f32)))
    assert jnp.allclose(out, ref_f32, atol=5e-2, rtol=5e-2), err_f32

    print("KERNEL_OK")
</pallas_src>

<mosaic_0001>
module attributes {stable_mosaic.version = 11 : i64} {
  func.func @kernel(%arg0: i32, %arg1: memref<1x256x4xf32, #tpu.memory_space<vmem>>, %arg2: memref<24x128xbf16, #tpu.memory_space<vmem>>, %arg3: memref<1x128xf32, #tpu.memory_space<vmem>>, %arg4: memref<640x128xbf16, #tpu.memory_space<vmem>>, %arg5: memref<1x128xf32, #tpu.memory_space<vmem>>, %arg6: memref<512x128xbf16, #tpu.memory_space<vmem>>, %arg7: memref<1x128xf32, #tpu.memory_space<vmem>>, %arg8: memref<384x128xbf16, #tpu.memory_space<vmem>>, %arg9: memref<1x128xf32, #tpu.memory_space<vmem>>, %arg10: memref<256x256xbf16, #tpu.memory_space<vmem>>, %arg11: memref<1x256xf32, #tpu.memory_space<vmem>>, %arg12: memref<1x8x256xf32, #tpu.memory_space<vmem>>, %arg13: memref<296x4xf32, #tpu.memory_space<vmem>>, %arg14: memref<96x128xf32, #tpu.memory_space<vmem>>, %arg15: memref<56x128xf32, #tpu.memory_space<vmem>>, %arg16: memref<40x128xf32, #tpu.memory_space<vmem>>, %arg17: memref<24x128xf32, #tpu.memory_space<vmem>>, %arg18: memref<72x24xf32, #tpu.memory_space<vmem>>) attributes {dimension_semantics = [#tpu.dimension_semantics<parallel>], iteration_bounds = array<i64: 2>, scalar_prefetch = 0 : i64, scratch_operands = 6 : i64, tpu.core_type = #tpu.core_type<tc>, window_params = [{transform_indices = @transform_0, window_bounds = array<i64: 1, 256, 4>}, {pipeline_mode = #tpu.pipeline_mode<synchronous>, transform_indices = @transform_1, window_bounds = array<i64: 24, 128>}, {pipeline_mode = #tpu.pipeline_mode<synchronous>, transform_indices = @transform_2, window_bounds = array<i64: 1, 128>}, {pipeline_mode = #tpu.pipeline_mode<synchronous>, transform_indices = @transform_3, window_bounds = array<i64: 640, 128>}, {pipeline_mode = #tpu.pipeline_mode<synchronous>, transform_indices = @transform_4, window_bounds = array<i64: 1, 128>}, {pipeline_mode = #tpu.pipeline_mode<synchronous>, transform_indices = @transform_5, window_bounds = array<i64: 512, 128>}, {pipeline_mode = #tpu.pipeline_mode<synchronous>, transform_indices = @transform_6, window_bounds = array<i64: 1, 128>}, {pipeline_mode = #tpu.pipeline_mode<synchronous>, transform_indices = @transform_7, window_bounds = array<i64: 384, 128>}, {pipeline_mode = #tpu.pipeline_mode<synchronous>, transform_indices = @transform_8, window_bounds = array<i64: 1, 128>}, {pipeline_mode = #tpu.pipeline_mode<synchronous>, transform_indices = @transform_9, window_bounds = array<i64: 256, 256>}, {pipeline_mode = #tpu.pipeline_mode<synchronous>, transform_indices = @transform_10, window_bounds = array<i64: 1, 256>}, {transform_indices = @transform_11, window_bounds = array<i64: 1, 8, 256>}]} {
    %cst = arith.constant 0.000000e+00 : f32
    %0 = vector.broadcast %cst : f32 to vector<8x4xf32>
    %c0 = arith.constant 0 : index
    %c0_0 = arith.constant 0 : index
    %1 = vector.load %arg13[%c0, %c0_0] : memref<296x4xf32, #tpu.memory_space<vmem>>, vector<8x4xf32>
    tpu.vector_store %arg13[%c0, %c0_0], %0 {strides = array<i32>} : memref<296x4xf32, #tpu.memory_space<vmem>>, vector<8x4xf32>,
    %cst_1 = arith.constant 0.000000e+00 : f32
    %2 = vector.broadcast %cst_1 : f32 to vector<32x4xf32>
    %c264 = arith.constant 264 : index
    %c0_2 = arith.constant 0 : index
    %3 = vector.load %arg13[%c264, %c0_2] : memref<296x4xf32, #tpu.memory_space<vmem>>, vector<32x4xf32>
    tpu.vector_store %arg13[%c264, %c0_2], %2 {strides = array<i32>} : memref<296x4xf32, #tpu.memory_space<vmem>>, vector<32x4xf32>,
    %cst_3 = arith.constant 0.000000e+00 : f32
    %4 = vector.broadcast %cst_3 : f32 to vector<8x128xf32>
    %c0_4 = arith.constant 0 : index
    %c0_5 = arith.constant 0 : index
    %5 = vector.load %arg14[%c0_4, %c0_5] : memref<96x128xf32, #tpu.memory_space<vmem>>, vector<8x128xf32>
    tpu.vector_store %arg14[%c0_4, %c0_5], %4 {strides = array<i32>} : memref<96x128xf32, #tpu.memory_space<vmem>>, vector<8x128xf32>,
    %cst_6 = arith.constant 0.000000e+00 : f32
    %6 = vector.broadcast %cst_6 : f32 to vector<16x128xf32>
    %c80 = arith.constant 80 : index
    %c0_7 = arith.constant 0 : index
    %7 = vector.load %arg14[%c80, %c0_7] : memref<96x128xf32, #tpu.memory_space<vmem>>, vector<16x128xf32>
    tpu.vector_store %arg14[%c80, %c0_7], %6 {strides = array<i32>} : memref<96x128xf32, #tpu.memory_space<vmem>>, vector<16x128xf32>,
    %cst_8 = arith.constant 0.000000e+00 : f32
    %8 = vector.broadcast %cst_8 : f32 to vector<8x128xf32>
    %c0_9 = arith.constant 0 : index
    %c0_10 = arith.constant 0 : index
    %9 = vector.load %arg15[%c0_9, %c0_10] : memref<56x128xf32, #tpu.memory_space<vmem>>, vector<8x128xf32>
    tpu.vector_store %arg15[%c0_9, %c0_10], %8 {strides = array<i32>} : memref<56x128xf32, #tpu.memory_space<vmem>>, vector<8x128xf32>,
    %cst_11 = arith.constant 0.000000e+00 : f32
    %10 = vector.broadcast %cst_11 : f32 to vector<8x128xf32>
    %c48 = arith.constant 48 : index
    %c0_12 = arith.constant 0 : index
    %11 = vector.load %arg15[%c48, %c0_12] : memref<56x128xf32, #tpu.memory_space<vmem>>, vector<8x128xf32>
    tpu.vector_store %arg15[%c48, %c0_12], %10 {strides = array<i32>} : memref<56x128xf32, #tpu.memory_space<vmem>>, vector<8x128xf32>,
    %cst_13 = arith.constant 0.000000e+00 : f32
    %12 = vector.broadcast %cst_13 : f32 to vector<8x128xf32>
    %c0_14 = arith.constant 0 : index
    %c0_15 = arith.constant 0 : index
    %13 = vector.load %arg16[%c0_14, %c0_15] : memref<40x128xf32, #tpu.memory_space<vmem>>, vector<8x128xf32>
    tpu.vector_store %arg16[%c0_14, %c0_15], %12 {strides = array<i32>} : memref<40x128xf32, #tpu.memory_space<vmem>>, vector<8x128xf32>,
    %cst_16 = arith.constant 0.000000e+00 : f32
    %14 = vector.broadcast %cst_16 : f32 to vector<8x128xf32>
    %c32 = arith.constant 32 : index
    %c0_17 = arith.constant 0 : index
    %15 = vector.load %arg16[%c32, %c0_17] : memref<40x128xf32, #tpu.memory_space<vmem>>, vector<8x128xf32>
    tpu.vector_store %arg16[%c32, %c0_17], %14 {strides = array<i32>} : memref<40x128xf32, #tpu.memory_space<vmem>>, vector<8x128xf32>,
    %cst_18 = arith.constant 0.000000e+00 : f32
    %16 = vector.broadcast %cst_18 : f32 to vector<8x128xf32>
    %c0_19 = arith.constant 0 : index
    %c0_20 = arith.constant 0 : index
    %17 = vector.load %arg17[%c0_19, %c0_20] : memref<24x128xf32, #tpu.memory_space<vmem>>, vector<8x128xf32>
    tpu.vector_store %arg17[%c0_19, %c0_20], %16 {strides = array<i32>} : memref<24x128xf32, #tpu.memory_space<vmem>>, vector<8x128xf32>,
    %18 = tpu.iota {dimensions = array<i32: 0>} : vector<72x1xi32>
    %c65_i32 = arith.constant 65 : i32
    %19 = vector.broadcast %c65_i32 : i32 to vector<72x1xi32>
    %20 = arith.cmpi slt, %18, %19 : vector<72x1xi32>
    %21 = tpu.iota {dimensions = array<i32: 0>} : vector<40x1xi32>
    %c33_i32 = arith.constant 33 : i32
    %22 = vector.broadcast %c33_i32 : i32 to vector<40x1xi32>
    %23 = arith.cmpi slt, %21, %22 : vector<40x1xi32>
    %24 = tpu.iota {dimensions = array<i32: 0>} : vector<24x1xi32>
    %c17_i32 = arith.constant 17 : i32
    %25 = vector.broadcast %c17_i32 : i32 to vector<24x1xi32>
    %26 = arith.cmpi slt, %24, %25 : vector<24x1xi32>
    %27 = tpu.iota {dimensions = array<i32: 0>} : vector<16x1xi32>
    %c9_i32 = arith.constant 9 : i32
    %28 = vector.broadcast %c9_i32 : i32 to vector<16x1xi32>
    %29 = arith.cmpi slt, %27, %28 : vector<16x1xi32>
    %30 = tpu.iota {dimensions = array<i32: 0>} : vector<8x1xi32>
    %c5_i32 = arith.constant 5 : i32
    %31 = vector.broadcast %c5_i32 : i32 to vector<8x1xi32>
    %32 = arith.cmpi slt, %30, %31 : vector<8x1xi32>
    %c0_21 = arith.constant 0 : index
    %c0_22 = arith.constant 0 : index
    %c0_23 = arith.constant 0 : index
    %33 = vector.load %arg1[%c0_21, %c0_22, %c0_23] : memref<1x256x4xf32, #tpu.memory_space<vmem>>, vector<1x256x4xf32>
    %34 = vector.shape_cast %33 : vector<1x256x4xf32> to vector<256x4xf32>
    %c8 = arith.constant 8 : index
    %c0_24 = arith.constant 0 : index
    %35 = vector.load %arg13[%c8, %c0_24] : memref<296x4xf32, #tpu.memory_space<vmem>>, vector<256x4xf32>
    tpu.vector_store %arg13[%c8, %c0_24], %34 {strides = array<i32>} : memref<296x4xf32, #tpu.memory_space<vmem>>, vector<256x4xf32>,
    %c5 = arith.constant 5 : index
    %c0_25 = arith.constant 0 : index
    %36 = tpu.strided_load %arg13[%c5, %c0_25] {strides = array<i32: 4, 1>} : memref<296x4xf32, #tpu.memory_space<vmem>>, vector<72x4xf32>
    %c6 = arith.constant 6 : index
    %c0_26 = arith.constant 0 : index
    %37 = tpu.strided_load %arg13[%c6, %c0_26] {strides = array<i32: 4, 1>} : memref<296x4xf32, #tpu.memory_space<vmem>>, vector<72x4xf32>
    %c7 = arith.constant 7 : index
    %c0_27 = arith.constant 0 : index
    %38 = tpu.strided_load %arg13[%c7, %c0_27] {strides = array<i32: 4, 1>} : memref<296x4xf32, #tpu.memory_space<vmem>>, vector<72x4xf32>
    %c8_28 = arith.constant 8 : index
    %c0_29 = arith.constant 0 : index
    %39 = tpu.strided_load %arg13[%c8_28, %c0_29] {strides = array<i32: 4, 1>} : memref<296x4xf32, #tpu.memory_space<vmem>>, vector<72x4xf32>
    %c9 = arith.constant 9 : index
    %c0_30 = arith.constant 0 : index
    %40 = tpu.strided_load %arg13[%c9, %c0_30] {strides = array<i32: 4, 1>} : memref<296x4xf32, #tpu.memory_space<vmem>>, vector<72x4xf32>
    %c10 = arith.constant 10 : index
    %c0_31 = arith.constant 0 : index
    %41 = tpu.strided_load %arg13[%c10, %c0_31] {strides = array<i32: 4, 1>} : memref<296x4xf32, #tpu.memory_space<vmem>>, vector<72x4xf32>
    %c0_32 = arith.constant 0 : index
    %c0_33 = arith.constant 0 : index
    %42 = vector.load %arg18[%c0_32, %c0_33] : memref<72x24xf32, #tpu.memory_space<vmem>>, vector<72x4xf32>
    tpu.vector_store %arg18[%c0_32, %c0_33], %36 {strides = array<i32>} : memref<72x24xf32, #tpu.memory_space<vmem>>, vector<72x4xf32>,
    %c0_34 = arith.constant 0 : index
    %c4 = arith.constant 4 : index
    %43 = vector.load %arg18[%c0_34, %c4] : memref<72x24xf32, #tpu.memory_space<vmem>>, vector<72x4xf32>
    tpu.vector_store %arg18[%c0_34, %c4], %37 {strides = array<i32>} : memref<72x24xf32, #tpu.memory_space<vmem>>, vector<72x4xf32>,
    %c0_35 = arith.constant 0 : index
    %c8_36 = arith.constant 8 : index
    %44 = vector.load %arg18[%c0_35, %c8_36] : memref<72x24xf32, #tpu.memory_space<vmem>>, vector<72x4xf32>
    tpu.vector_store %arg18[%c0_35, %c8_36], %38 {strides = array<i32>} : memref<72x24xf32, #tpu.memory_space<vmem>>, vector<72x4xf32>,
    %c0_37 = arith.constant 0 : index
    %c12 = arith.constant 12 : index
    %45 = vector.load %arg18[%c0_37, %c12] : memref<72x24xf32, #tpu.memory_space<vmem>>, vector<72x4xf32>
    tpu.vector_store %arg18[%c0_37, %c12], %39 {strides = array<i32>} : memref<72x24xf32, #tpu.memory_space<vmem>>, vector<72x4xf32>,
    %c0_38 = arith.constant 0 : index
    %c16 = arith.constant 16 : index
    %46 = vector.load %arg18[%c0_38, %c16] : memref<72x24xf32, #tpu.memory_space<vmem>>, vector<72x4xf32>
    tpu.vector_store %arg18[%c0_38, %c16], %40 {strides = array<i32>} : memref<72x24xf32, #tpu.memory_space<vmem>>, vector<72x4xf32>,
    %c0_39 = arith.constant 0 : index
    %c20 = arith.constant 20 : index
    %47 = vector.load %arg18[%c0_39, %c20] : memref<72x24xf32, #tpu.memory_space<vmem>>, vector<72x4xf32>
    tpu.vector_store %arg18[%c0_39, %c20], %41 {strides = array<i32>} : memref<72x24xf32, #tpu.memory_space<vmem>>, vector<72x4xf32>,
    %c0_40 = arith.constant 0 : index
    %c0_41 = arith.constant 0 : index
    %48 = vector.load %arg18[%c0_40, %c0_41] : memref<72x24xf32, #tpu.memory_space<vmem>>, vector<72x24xf32>
    %49 = arith.truncf %48 : vector<72x24xf32> to vector<72x24xbf16>
    %c0_42 = arith.constant 0 : index
    %c0_43 = arith.constant 0 : index
    %50 = vector.load %arg2[%c0_42, %c0_43] : memref<24x128xbf16, #tpu.memory_space<vmem>>, vector<24x128xbf16>
    %cst_44 = arith.constant dense<0.000000e+00> : vector<72x128xf32>
    %51 = tpu.matmul %49, %50, %cst_44 {dimension_numbers = #tpu.dot_dimension_numbers<[1], [0], [0], [1], [0, 0, 1, 1], [], []>} : vector<72x24xbf16>, vector<24x128xbf16>, vector<72x128xf32> -> vector<72x128xf32>
    %c0_45 = arith.constant 0 : index
    %c0_46 = arith.constant 0 : index
    %52 = vector.load %arg3[%c0_45, %c0_46] : memref<1x128xf32, #tpu.memory_space<vmem>>, vector<1x128xf32>
    %53 = vector.broadcast %52 : vector<1x128xf32> to vector<72x128xf32>
    %54 = arith.addf %51, %53 : vector<72x128xf32>
    %cst_47 = arith.constant 0.000000e+00 : f32
    %55 = vector.broadcast %cst_47 : f32 to vector<72x128xf32>
    %56 = arith.maximumf %54, %55 : vector<72x128xf32>
    %cst_48 = arith.constant 0.000000e+00 : f32
    %57 = vector.shape_cast %20 : vector<72x1xi1> to vector<72x1xi1>
    %58 = vector.broadcast %57 : vector<72x1xi1> to vector<72x128xi1>
    %59 = vector.broadcast %cst_48 : f32 to vector<72x128xf32>
    %60 = arith.select %58, %56, %59 : vector<72x128xi1>, vector<72x128xf32>
    %c8_49 = arith.constant 8 : index
    %c0_50 = arith.constant 0 : index
    %61 = vector.load %arg14[%c8_49, %c0_50] : memref<96x128xf32, #tpu.memory_space<vmem>>, vector<72x128xf32>
    tpu.vector_store %arg14[%c8_49, %c0_50], %60 {strides = array<i32>} : memref<96x128xf32, #tpu.memory_space<vmem>>, vector<72x128xf32>,
    %c6_51 = arith.constant 6 : index
    %c0_52 = arith.constant 0 : index
    %62 = tpu.strided_load %arg14[%c6_51, %c0_52] {strides = array<i32: 2, 1>} : memref<96x128xf32, #tpu.memory_space<vmem>>, vector<40x128xf32>
    %c7_53 = arith.constant 7 : index
    %c0_54 = arith.constant 0 : index
    %63 = tpu.strided_load %arg14[%c7_53, %c0_54] {strides = array<i32: 2, 1>} : memref<96x128xf32, #tpu.memory_space<vmem>>, vector<40x128xf32>
    %c8_55 = arith.constant 8 : index
    %c0_56 = arith.constant 0 : index
    %64 = tpu.strided_load %arg14[%c8_55, %c0_56] {strides = array<i32: 2, 1>} : memref<96x128xf32, #tpu.memory_space<vmem>>, vector<40x128xf32>
    %c9_57 = arith.constant 9 : index
    %c0_58 = arith.constant 0 : index
    %65 = tpu.strided_load %arg14[%c9_57, %c0_58] {strides = array<i32: 2, 1>} : memref<96x128xf32, #tpu.memory_space<vmem>>, vector<40x128xf32>
    %c10_59 = arith.constant 10 : index
    %c0_60 = arith.constant 0 : index
    %66 = tpu.strided_load %arg14[%c10_59, %c0_60] {strides = array<i32: 2, 1>} : memref<96x128xf32, #tpu.memory_space<vmem>>, vector<40x128xf32>
    %67 = tpu.concatenate %62, %63, %64, %65, %66 in 1 : vector<40x128xf32>, vector<40x128xf32>, vector<40x128xf32>, vector<40x128xf32>, vector<40x128xf32> -> vector<40x640xf32>
    %68 = arith.truncf %67 : vector<40x640xf32> to vector<40x640xbf16>
    %c0_61 = arith.constant 0 : index
    %c0_62 = arith.constant 0 : index
    %69 = vector.load %arg4[%c0_61, %c0_62] : memref<640x128xbf16, #tpu.memory_space<vmem>>, vector<640x128xbf16>
    %cst_63 = arith.constant dense<0.000000e+00> : vector<40x128xf32>
    %70 = tpu.matmul %68, %69, %cst_63 {dimension_numbers = #tpu.dot_dimension_numbers<[1], [0], [0], [1], [0, 0, 1, 1], [], []>} : vector<40x640xbf16>, vector<640x128xbf16>, vector<40x128xf32> -> vector<40x128xf32>
    %c0_64 = arith.constant 0 : index
    %c0_65 = arith.constant 0 : index
    %71 = vector.load %arg5[%c0_64, %c0_65] : memref<1x128xf32, #tpu.memory_space<vmem>>, vector<1x128xf32>
    %72 = vector.broadcast %71 : vector<1x128xf32> to vector<40x128xf32>
    %73 = arith.addf %70, %72 : vector<40x128xf32>
    %cst_66 = arith.constant 0.000000e+00 : f32
    %74 = vector.broadcast %cst_66 : f32 to vector<40x128xf32>
    %75 = arith.maximumf %73, %74 : vector<40x128xf32>
    %cst_67 = arith.constant 0.000000e+00 : f32
    %76 = vector.shape_cast %23 : vector<40x1xi1> to vector<40x1xi1>
    %77 = vector.broadcast %76 : vector<40x1xi1> to vector<40x128xi1>
    %78 = vector.broadcast %cst_67 : f32 to vector<40x128xf32>
    %79 = arith.select %77, %75, %78 : vector<40x128xi1>, vector<40x128xf32>
    %c8_68 = arith.constant 8 : index
    %c0_69 = arith.constant 0 : index
    %80 = vector.load %arg15[%c8_68, %c0_69] : memref<56x128xf32, #tpu.memory_space<vmem>>, vector<40x128xf32>
    tpu.vector_store %arg15[%c8_68, %c0_69], %79 {strides = array<i32>} : memref<56x128xf32, #tpu.memory_space<vmem>>, vector<40x128xf32>,
    %c6_70 = arith.constant 6 : index
    %c0_71 = arith.constant 0 : index
    %81 = tpu.strided_load %arg15[%c6_70, %c0_71] {strides = array<i32: 2, 1>} : memref<56x128xf32, #tpu.memory_space<vmem>>, vector<24x128xf32>
    %c7_72 = arith.constant 7 : index
    %c0_73 = arith.constant 0 : index
    %82 = tpu.strided_load %arg15[%c7_72, %c0_73] {strides = array<i32: 2, 1>} : memref<56x128xf32, #tpu.memory_space<vmem>>, vector<24x128xf32>
    %c8_74 = arith.constant 8 : index
    %c0_75 = arith.constant 0 : index
    %83 = tpu.strided_load %arg15[%c8_74, %c0_75] {strides = array<i32: 2, 1>} : memref<56x128xf32, #tpu.memory_space<vmem>>, vector<24x128xf32>
    %c9_76 = arith.constant 9 : index
    %c0_77 = arith.constant 0 : index
    %84 = tpu.strided_load %arg15[%c9_76, %c0_77] {strides = array<i32: 2, 1>} : memref<56x128xf32, #tpu.memory_space<vmem>>, vector<24x128xf32>
    %85 = tpu.concatenate %81, %82, %83, %84 in 1 : vector<24x128xf32>, vector<24x128xf32>, vector<24x128xf32>, vector<24x128xf32> -> vector<24x512xf32>
    %86 = arith.truncf %85 : vector<24x512xf32> to vector<24x512xbf16>
    %c0_78 = arith.constant 0 : index
    %c0_79 = arith.constant 0 : index
    %87 = vector.load %arg6[%c0_78, %c0_79] : memref<512x128xbf16, #tpu.memory_space<vmem>>, vector<512x128xbf16>
    %cst_80 = arith.constant dense<0.000000e+00> : vector<24x128xf32>
    %88 = tpu.matmul %86, %87, %cst_80 {dimension_numbers = #tpu.dot_dimension_numbers<[1], [0], [0], [1], [0, 0, 1, 1], [], []>} : vector<24x512xbf16>, vector<512x128xbf16>, vector<24x128xf32> -> vector<24x128xf32>
    %c0_81 = arith.constant 0 : index
    %c0_82 = arith.constant 0 : index
    %89 = vector.load %arg7[%c0_81, %c0_82] : memref<1x128xf32, #tpu.memory_space<vmem>>, vector<1x128xf32>
    %90 = vector.broadcast %89 : vector<1x128xf32> to vector<24x128xf32>
    %91 = arith.addf %88, %90 : vector<24x128xf32>
    %cst_83 = arith.constant 0.000000e+00 : f32
    %92 = vector.broadcast %cst_83 : f32 to vector<24x128xf32>
    %93 = arith.maximumf %91, %92 : vector<24x128xf32>
    %cst_84 = arith.constant 0.000000e+00 : f32
    %94 = vector.shape_cast %26 : vector<24x1xi1> to vector<24x1xi1>
    %95 = vector.broadcast %94 : vector<24x1xi1> to vector<24x128xi1>
    %96 = vector.broadcast %cst_84 : f32 to vector<24x128xf32>
    %97 = arith.select %95, %93, %96 : vector<24x128xi1>, vector<24x128xf32>
    %c8_85 = arith.constant 8 : index
    %c0_86 = arith.constant 0 : index
    %98 = vector.load %arg16[%c8_85, %c0_86] : memref<40x128xf32, #tpu.memory_space<vmem>>, vector<24x128xf32>
    tpu.vector_store %arg16[%c8_85, %c0_86], %97 {strides = array<i32>} : memref<40x128xf32, #tpu.memory_space<vmem>>, vector<24x128xf32>,
    %c7_87 = arith.constant 7 : index
    %c0_88 = arith.constant 0 : index
    %99 = tpu.strided_load %arg16[%c7_87, %c0_88] {strides = array<i32: 2, 1>} : memref<40x128xf32, #tpu.memory_space<vmem>>, vector<16x128xf32>
    %c8_89 = arith.constant 8 : index
    %c0_90 = arith.constant 0 : index
    %100 = tpu.strided_load %arg16[%c8_89, %c0_90] {strides = array<i32: 2, 1>} : memref<40x128xf32, #tpu.memory_space<vmem>>, vector<16x128xf32>
    %c9_91 = arith.constant 9 : index
    %c0_92 = arith.constant 0 : index
    %101 = tpu.strided_load %arg16[%c9_91, %c0_92] {strides = array<i32: 2, 1>} : memref<40x128xf32, #tpu.memory_space<vmem>>, vector<16x128xf32>
    %102 = tpu.concatenate %99, %100, %101 in 1 : vector<16x128xf32>, vector<16x128xf32>, vector<16x128xf32> -> vector<16x384xf32>
    %103 = arith.truncf %102 : vector<16x384xf32> to vector<16x384xbf16>
    %c0_93 = arith.constant 0 : index
    %c0_94 = arith.constant 0 : index
    %104 = vector.load %arg8[%c0_93, %c0_94] : memref<384x128xbf16, #tpu.memory_space<vmem>>, vector<384x128xbf16>
    %cst_95 = arith.constant dense<0.000000e+00> : vector<16x128xf32>
    %105 = tpu.matmul %103, %104, %cst_95 {dimension_numbers = #tpu.dot_dimension_numbers<[1], [0], [0], [1], [0, 0, 1, 1], [], []>} : vector<16x384xbf16>, vector<384x128xbf16>, vector<16x128xf32> -> vector<16x128xf32>
    %c0_96 = arith.constant 0 : index
    %c0_97 = arith.constant 0 : index
    %106 = vector.load %arg9[%c0_96, %c0_97] : memref<1x128xf32, #tpu.memory_space<vmem>>, vector<1x128xf32>
    %107 = vector.broadcast %106 : vector<1x128xf32> to vector<16x128xf32>
    %108 = arith.addf %105, %107 : vector<16x128xf32>
    %cst_98 = arith.constant 0.000000e+00 : f32
    %109 = vector.broadcast %cst_98 : f32 to vector<16x128xf32>
    %110 = arith.maximumf %108, %109 : vector<16x128xf32>
    %cst_99 = arith.constant 0.000000e+00 : f32
    %111 = vector.shape_cast %29 : vector<16x1xi1> to vector<16x1xi1>
    %112 = vector.broadcast %111 : vector<16x1xi1> to vector<16x128xi1>
    %113 = vector.broadcast %cst_99 : f32 to vector<16x128xf32>
    %114 = arith.select %112, %110, %113 : vector<16x128xi1>, vector<16x128xf32>
    %c8_100 = arith.constant 8 : index
    %c0_101 = arith.constant 0 : index
    %115 = vector.load %arg17[%c8_100, %c0_101] : memref<24x128xf32, #tpu.memory_space<vmem>>, vector<16x128xf32>
    tpu.vector_store %arg17[%c8_100, %c0_101], %114 {strides = array<i32>} : memref<24x128xf32, #tpu.memory_space<vmem>>, vector<16x128xf32>,
    %c7_102 = arith.constant 7 : index
    %c0_103 = arith.constant 0 : index
    %116 = tpu.strided_load %arg17[%c7_102, %c0_103] {strides = array<i32: 2, 1>} : memref<24x128xf32, #tpu.memory_space<vmem>>, vector<8x128xf32>
    %c8_104 = arith.constant 8 : index
    %c0_105 = arith.constant 0 : index
    %117 = tpu.strided_load %arg17[%c8_104, %c0_105] {strides = array<i32: 2, 1>} : memref<24x128xf32, #tpu.memory_space<vmem>>, vector<8x128xf32>
    %118 = tpu.concatenate %116, %117 in 1 : vector<8x128xf32>, vector<8x128xf32> -> vector<8x256xf32>
    %119 = arith.truncf %118 : vector<8x256xf32> to vector<8x256xbf16>
    %c0_106 = arith.constant 0 : index
    %c0_107 = arith.constant 0 : index
    %120 = vector.load %arg10[%c0_106, %c0_107] : memref<256x256xbf16, #tpu.memory_space<vmem>>, vector<256x256xbf16>
    %cst_108 = arith.constant dense<0.000000e+00> : vector<8x256xf32>
    %121 = tpu.matmul %119, %120, %cst_108 {dimension_numbers = #tpu.dot_dimension_numbers<[1], [0], [0], [1], [0, 0, 1, 1], [], []>} : vector<8x256xbf16>, vector<256x256xbf16>, vector<8x256xf32> -> vector<8x256xf32>
    %c0_109 = arith.constant 0 : index
    %c0_110 = arith.constant 0 : index
    %122 = vector.load %arg11[%c0_109, %c0_110] : memref<1x256xf32, #tpu.memory_space<vmem>>, vector<1x256xf32>
    %123 = vector.broadcast %122 : vector<1x256xf32> to vector<8x256xf32>
    %124 = arith.addf %121, %123 : vector<8x256xf32>
    %cst_111 = arith.constant 0.000000e+00 : f32
    %125 = vector.broadcast %cst_111 : f32 to vector<8x256xf32>
    %126 = arith.maximumf %124, %125 : vector<8x256xf32>
    %cst_112 = arith.constant 0.000000e+00 : f32
    %127 = vector.shape_cast %32 : vector<8x1xi1> to vector<8x1xi1>
    %128 = vector.broadcast %127 : vector<8x1xi1> to vector<8x256xi1>
    %129 = vector.broadcast %cst_112 : f32 to vector<8x256xf32>
    %130 = arith.select %128, %126, %129 : vector<8x256xi1>, vector<8x256xf32>
    %c0_113 = arith.constant 0 : index
    %c0_114 = arith.constant 0 : index
    %c0_115 = arith.constant 0 : index
    %131 = vector.load %arg12[%c0_113, %c0_114, %c0_115] : memref<1x8x256xf32, #tpu.memory_space<vmem>>, vector<1x8x256xf32>
    %132 = vector.shape_cast %131 : vector<1x8x256xf32> to vector<8x256xf32>
    %133 = vector.shape_cast %130 : vector<8x256xf32> to vector<1x8x256xf32>
    tpu.vector_store %arg12[%c0_113, %c0_114, %c0_115], %133 {strides = array<i32>} : memref<1x8x256xf32, #tpu.memory_space<vmem>>, vector<1x8x256xf32>,
    return
  }
  func.func @transform_0(%arg0: i32) -> (i32, i32, i32) {
    %c0_i32 = arith.constant 0 : i32
    %c0_i32_0 = arith.constant 0 : i32
    %c0_i32_1 = arith.constant 0 : i32
    return %arg0, %c0_i32, %c0_i32_0 : i32, i32, i32
  }
  func.func @transform_1(%arg0: i32) -> (i32, i32) {
    %c0_i32 = arith.constant 0 : i32
    %c0_i32_0 = arith.constant 0 : i32
    %c0_i32_1 = arith.constant 0 : i32
    return %c0_i32, %c0_i32_0 : i32, i32
  }
  func.func @transform_2(%arg0: i32) -> (i32, i32) {
    %c0_i32 = arith.constant 0 : i32
    %c0_i32_0 = arith.constant 0 : i32
    %c0_i32_1 = arith.constant 0 : i32
    return %c0_i32, %c0_i32_0 : i32, i32
  }
  func.func @transform_3(%arg0: i32) -> (i32, i32) {
    %c0_i32 = arith.constant 0 : i32
    %c0_i32_0 = arith.constant 0 : i32
    %c0_i32_1 = arith.constant 0 : i32
    return %c0_i32, %c0_i32_0 : i32, i32
  }
  func.func @transform_4(%arg0: i32) -> (i32, i32) {
    %c0_i32 = arith.constant 0 : i32
    %c0_i32_0 = arith.constant 0 : i32
    %c0_i32_1 = arith.constant 0 : i32
    return %c0_i32, %c0_i32_0 : i32, i32
  }
  func.func @transform_5(%arg0: i32) -> (i32, i32) {
    %c0_i32 = arith.constant 0 : i32
    %c0_i32_0 = arith.constant 0 : i32
    %c0_i32_1 = arith.constant 0 : i32
    return %c0_i32, %c0_i32_0 : i32, i32
  }
  func.func @transform_6(%arg0: i32) -> (i32, i32) {
    %c0_i32 = arith.constant 0 : i32
    %c0_i32_0 = arith.constant 0 : i32
    %c0_i32_1 = arith.constant 0 : i32
    return %c0_i32, %c0_i32_0 : i32, i32
  }
  func.func @transform_7(%arg0: i32) -> (i32, i32) {
    %c0_i32 = arith.constant 0 : i32
    %c0_i32_0 = arith.constant 0 : i32
    %c0_i32_1 = arith.constant 0 : i32
    return %c0_i32, %c0_i32_0 : i32, i32
  }
  func.func @transform_8(%arg0: i32) -> (i32, i32) {
    %c0_i32 = arith.constant 0 : i32
    %c0_i32_0 = arith.constant 0 : i32
    %c0_i32_1 = arith.constant 0 : i32
    return %c0_i32, %c0_i32_0 : i32, i32
  }
  func.func @transform_9(%arg0: i32) -> (i32, i32) {
    %c0_i32 = arith.constant 0 : i32
    %c0_i32_0 = arith.constant 0 : i32
    %c0_i32_1 = arith.constant 0 : i32
    return %c0_i32, %c0_i32_0 : i32, i32
  }
  func.func @transform_10(%arg0: i32) -> (i32, i32) {
    %c0_i32 = arith.constant 0 : i32
    %c0_i32_0 = arith.constant 0 : i32
    %c0_i32_1 = arith.constant 0 : i32
    return %c0_i32, %c0_i32_0 : i32, i32
  }
  func.func @transform_11(%arg0: i32) -> (i32, i32, i32) {
    %c0_i32 = arith.constant 0 : i32
    %c0_i32_0 = arith.constant 0 : i32
    %c0_i32_1 = arith.constant 0 : i32
    return %arg0, %c0_i32, %c0_i32_0 : i32, i32, i32
  }
}

</mosaic_0001>

<bundles_post_ra>
// kernel: conv_branch_forward.1
= control target key start
LH: loop header
LB: loop body
LE: loop exit
PB: predicated region body
PF: predicated region fallthrough
CT: control target
= control target key end

     0   :  { %s3258_s17 = smov 0   ;;  %s3937_s0 = inlined_call_operand.vmem [shape: f32[2,256,4], index: 0, kind: input, shape index: {}]   ;;  %s3938_s1 = inlined_call_operand.vmem [shape: bf16[24,128], index: 1, kind: input, shape index: {}]   ;;  %s3939_s2 = inlined_call_operand.vmem [shape: f32[1,128], index: 2, kind: input, shape index: {}]   ;;  %s3940_s3 = inlined_call_operand.vmem [shape: bf16[640,128], index: 3, kind: input, shape index: {}]   ;;  %s3941_s4 = inlined_call_operand.vmem [shape: f32[1,128], index: 4, kind: input, shape index: {}]   ;;  %s3942_s5 = inlined_call_operand.vmem [shape: bf16[512,128], index: 5, kind: input, shape index: {}]   ;;  %s3943_s6 = inlined_call_operand.vmem [shape: f32[1,128], index: 6, kind: input, shape index: {}]   ;;  %s3944_s7 = inlined_call_operand.vmem [shape: bf16[384,128], index: 7, kind: input, shape index: {}]   ;;  %s3945_s8 = inlined_call_operand.vmem [shape: f32[1,128], index: 8, kind: input, shape index: {}]   ;;  %s3946_s9 = inlined_call_operand.vmem [shape: bf16[256,256], index: 9, kind: input, shape index: {}]   ;;  %s3947_s10 = inlined_call_operand.vmem [shape: f32[1,256], index: 10, kind: input, shape index: {}]   ;;  %s3948_s11 = inlined_call_operand.vmem [shape: f32[2,8,256], index: 11, kind: output, shape index: {}]  }
   0x1 LB: > { %s2624_s18 = sadd.s32 4294967295, %s3189_s17   ;;  %p2628_p0 = scmp.ge.s32.totalorder %s3189_s17, 1  ;;  %s3189_s17 = sphi %s3258_s17, %s21_s17  }
   0x2   : > { %p337_p1 = scmp.lt.s32.totalorder %s3189_s17, 3 }
   0x4   : > { %p338_p2 = pnand %p2628_p0, %p337_p1 }
   0x5   : > { %p3266_p3 = scmp.lt.s32.totalorder (!%p338_p2), %s2624_s18, 1  ;;  %vm388_vm0 = vcmask (!%p338_p2), 31744   ;;  %v3191_v0 = vmov (!%p338_p2), 0.0   ;;  %s3192_s24 = smov (!%p338_p2), 8   ;;  %vm892_vm1 = vcmask (!%p338_p2), 1043456   ;;  %v3036_v45 = vld [vmem:[%s3938_s1] sm:$0xff] (!%p338_p2)  }
   0x6   : > { %341 = sbr.rel (%p338_p2) target bundleno = 1411 (0x583), region = 64  ;;  %389 = vst.msk [vmem:[#allocation2] sm:$0xff] (!%p338_p2), %vm388_vm0, %v3191_v0  ;;  %390 = vst.msk [vmem:[#allocation2 + $0x108] sm:$0xff] (!%p338_p2), %vm388_vm0, %v3191_v0  ;;  %2949 = vmatprep.subr.bf16.mxu1 (!%p338_p2), %v3191_v0  ;;  %s3193_s25 = smov (!%p338_p2), 4   ;;  %v3037_v48 = vld [vmem:[%s3938_s1 + $0x8] ss:$0 sps:$4 sm:$0xff] (!%p338_p2)  }
   0x7   : > { %391 = vst.msk [vmem:[#allocation2 + $0x110] sm:$0xff] (!%p338_p2), %vm388_vm0, %v3191_v0  ;;  %392 = vst.msk [vmem:[#allocation2 + $0x118] sm:$0xff] (!%p338_p2), %vm388_vm0, %v3191_v0  ;;  %s3194_s26 = smov (!%p338_p2), 12   ;;  %s3195_s27 = smov (!%p338_p2), 16   ;;  %vm3196_vm2 = vmmov (!%p338_p2), 0   ;;  %2950 = vmatpush3.bf16.msra.mxu1 (!%p338_p2), %v3036_v45  ;;  %v894_v49 = vsel (!%p338_p2), %vm892_vm1, %v3037_v48, 0 }
   0x8   : > { %393 = vst.msk [vmem:[#allocation2 + $0x120] sm:$0xff] (!%p338_p2), %vm388_vm0, %v3191_v0  ;;  %394 = vst [vmem:[#allocation3] sm:$0xff] (!%p338_p2), %v3191_v0  ;;  %2953 = vmatprep.mubr.msk.bf16.mxu1 (!%p338_p2), %vm3196_vm2, %v3191_v0  ;;  %2951 = vmatprep.subr.bf16.mxu1 (!%p338_p2), %v3191_v0  ;;  %s3197_s13 = smov (!%p338_p2), 20   ;;  %vm649_vm3 = vcmask (!%p338_p2), 64544   ;;  %vm695_vm4 = vcmask (!%p338_p2), 97344   ;;  %vm741_vm5 = vcmask (!%p338_p2), 130144  }
   0x9   : > { %395 = vst [vmem:[#allocation3 + $0x50] sm:$0xff] (!%p338_p2), %v3191_v0  ;;  %396 = vst [vmem:[#allocation3 + $0x58] sm:$0xff] (!%p338_p2), %v3191_v0  ;;  %vm787_vm6 = vcmask (!%p338_p2), 162944   ;;  %vm833_vm7 = vcmask (!%p338_p2), 195744   ;;  %vm876_vm8 = vcmask (!%p338_p2), 195584  }
   0xa   : > { %397 = vst [vmem:[#allocation4] sm:$0xff] (!%p338_p2), %v3191_v0  ;;  %398 = vst [vmem:[#allocation4 + $0x30] sm:$0xff] (!%p338_p2), %v3191_v0 }
   0xb   : > { %399 = vst [vmem:[#allocation5] sm:$0xff] (!%p338_p2), %v3191_v0  ;;  %400 = vst [vmem:[#allocation5 + $0x20] sm:$0xff] (!%p338_p2), %v3191_v0  ;;  %2952 = vmatpush3.bf16.msra.mxu1 (!%p338_p2), %v894_v49 }
   0xc   : > { %401 = vst [vmem:[#allocation6] sm:$0xff] (!%p338_p2), %v3191_v0 }
   0xd   : > { %s3951_s18 = smov (!%p3266_p3, %s2624_s18), 1 }
   0xe   : > { %s2774_s20 = sshll.u32 %s3951_s18, 8 }
   0xf   : > { %s3297_s23 = scalar_lea.vmem %s3937_s0, %s2774_s20 }
  0x10   : > { %v432_v1 = vld [vmem:[%s3297_s23] sm:$0xff]  ;;  %v433_v2 = vld [vmem:[%s3297_s23 + $0x8] sm:$0xff]  ;;  %v434_v3 = vld [vmem:[%s3297_s23 + $0x10] sm:$0xff] }
  0x11   : > { %v435_v4 = vld [vmem:[%s3297_s23 + $0x18] sm:$0xff]  ;;  %464 = vst.msk [vmem:[#allocation2 + $0x8] sm:$0xff] %vm388_vm0, %v432_v1  ;;  %465 = vst.msk [vmem:[#allocation2 + $0x10] sm:$0xff] %vm388_vm0, %v433_v2  ;;  %v436_v5 = vld [vmem:[%s3297_s23 + $0x20] sm:$0xff] }
  0x12   : > { %466 = vst.msk [vmem:[#allocation2 + $0x18] sm:$0xff] %vm388_vm0, %v434_v3  ;;  %v437_v6 = vld [vmem:[%s3297_s23 + $0x28] sm:$0xff]  ;;  %467 = vst.msk [vmem:[#allocation2 + $0x20] sm:$0xff] %vm388_vm0, %v435_v4  ;;  %v438_v7 = vld [vmem:[%s3297_s23 + $0x30] sm:$0xff] }
  0x13   : > { %v439_v8 = vld [vmem:[%s3297_s23 + $0x38] sm:$0xff]  ;;  %468 = vst.msk [vmem:[#allocation2 + $0x28] sm:$0xff] %vm388_vm0, %v436_v5  ;;  %469 = vst.msk [vmem:[#allocation2 + $0x30] sm:$0xff] %vm388_vm0, %v437_v6  ;;  %v444_v10 = vld [vmem:[%s3297_s23 + $0x60] sm:$0xff] }
  0x14   : > { %v443_v9 = vld [vmem:[%s3297_s23 + $0x58] sm:$0xff]  ;;  %470 = vst.msk [vmem:[#allocation2 + $0x38] sm:$0xff] %vm388_vm0, %v438_v7  ;;  %471 = vst.msk [vmem:[#allocation2 + $0x40] sm:$0xff] %vm388_vm0, %v439_v8  ;;  %v445_v11 = vld [vmem:[%s3297_s23 + $0x68] sm:$0xff] }
  0x15   : > { %v446_v12 = vld [vmem:[%s3297_s23 + $0x70] sm:$0xff]  ;;  %475 = vst.msk [vmem:[#allocation2 + $0x60] sm:$0xff] %vm388_vm0, %v443_v9  ;;  %v447_v13 = vld [vmem:[%s3297_s23 + $0x78] sm:$0xff]  ;;  %476 = vst.msk [vmem:[#allocation2 + $0x68] sm:$0xff] %vm388_vm0, %v444_v10 }
  0x16   : > { %477 = vst.msk [vmem:[#allocation2 + $0x70] sm:$0xff] %vm388_vm0, %v445_v11  ;;  %478 = vst.msk [vmem:[#allocation2 + $0x78] sm:$0xff] %vm388_vm0, %v446_v12  ;;  %v440_v14 = vld [vmem:[%s3297_s23 + $0x40] sm:$0xff]  ;;  %v441_v15 = vld [vmem:[%s3297_s23 + $0x48] sm:$0xff] }
  0x17   : > { %479 = vst.msk [vmem:[#allocation2 + $0x80] sm:$0xff] %vm388_vm0, %v447_v13  ;;  %v442_v16 = vld [vmem:[%s3297_s23 + $0x50] sm:$0xff]  ;;  %472 = vst.msk [vmem:[#allocation2 + $0x48] sm:$0xff] %vm388_vm0, %v440_v14  ;;  %v451_v17 = vld [vmem:[%s3297_s23 + $0x98] sm:$0xff] }
  0x18   : > { %473 = vst.msk [vmem:[#allocation2 + $0x50] sm:$0xff] %vm388_vm0, %v441_v15  ;;  %v452_v18 = vld [vmem:[%s3297_s23 + $0xa0] sm:$0xff]  ;;  %474 = vst.msk [vmem:[#allocation2 + $0x58] sm:$0xff] %vm388_vm0, %v442_v16  ;;  %v453_v19 = vld [vmem:[%s3297_s23 + $0xa8] sm:$0xff] }
  0x19   : > { %v454_v20 = vld [vmem:[%s3297_s23 + $0xb0] sm:$0xff]  ;;  %v455_v21 = vld [vmem:[%s3297_s23 + $0xb8] sm:$0xff]  ;;  %483 = vst.msk [vmem:[#allocation2 + $0xa0] sm:$0xff] %vm388_vm0, %v451_v17  ;;  %484 = vst.msk [vmem:[#allocation2 + $0xa8] sm:$0xff] %vm388_vm0, %v452_v18 }
  0x1a   : > { %485 = vst.msk [vmem:[#allocation2 + $0xb0] sm:$0xff] %vm388_vm0, %v453_v19  ;;  %486 = vst.msk [vmem:[#allocation2 + $0xb8] sm:$0xff] %vm388_vm0, %v454_v20  ;;  %v448_v22 = vld [vmem:[%s3297_s23 + $0x80] sm:$0xff]  ;;  %v449_v23 = vld [vmem:[%s3297_s23 + $0x88] sm:$0xff] }
  0x1b   : > { %487 = vst.msk [vmem:[#allocation2 + $0xc0] sm:$0xff] %vm388_vm0, %v455_v21  ;;  %v450_v24 = vld [vmem:[%s3297_s23 + $0x90] sm:$0xff]  ;;  %480 = vst.msk [vmem:[#allocation2 + $0x88] sm:$0xff] %vm388_vm0, %v448_v22  ;;  %v459_v25 = vld [vmem:[%s3297_s23 + $0xd8] sm:$0xff] }
  0x1c   : > { %481 = vst.msk [vmem:[#allocation2 + $0x90] sm:$0xff] %vm388_vm0, %v449_v23  ;;  %482 = vst.msk [vmem:[#allocation2 + $0x98] sm:$0xff] %vm388_vm0, %v450_v24  ;;  %v460_v26 = vld [vmem:[%s3297_s23 + $0xe0] sm:$0xff]  ;;  %v461_v27 = vld [vmem:[%s3297_s23 + $0xe8] sm:$0xff] }
  0x1d   : > { %v533_v28 = vld [vmem:[#allocation2 + $0x7] ss:$4 sm:$0xff]  ;;  %v515_v29 = vld [vmem:[#allocation2 + $0x6] ss:$4 sm:$0xff]  ;;  %491 = vst.msk [vmem:[#allocation2 + $0xe0] sm:$0xff] %vm388_vm0, %v459_v25  ;;  %492 = vst.msk [vmem:[#allocation2 + $0xe8] sm:$0xff] %vm388_vm0, %v460_v26 }
  0x1e   : > { %493 = vst.msk [vmem:[#allocation2 + $0xf0] sm:$0xff] %vm388_vm0, %v461_v27  ;;  %668 = vrot.lane.b32.xlu1 %v533_v28, %s3192_s24  ;;  %622 = vrot.lane.b32.xlu0 %v515_v29, %s3193_s25  ;;  %v535_v30 = vld [vmem:[#allocation2 + $0x27] ss:$4 sm:$0xff]  ;;  %v517_v31 = vld [vmem:[#allocation2 + $0x26] ss:$4 sm:$0xff] }
  0x1f   : > { %v553_v32 = vld [vmem:[#allocation2 + $0x28] ss:$4 sm:$0xff]  ;;  %v571_v34 = vld [vmem:[#allocation2 + $0x29] ss:$4 sm:$0xff]  ;;  %v589_v41 = vld [vmem:[#allocation2 + $0x2a] ss:$4 sm:$0xff] }
  0x20   : > { %v551_v33 = vld [vmem:[#allocation2 + $0x8] ss:$4 sm:$0xff]  ;;  %v569_v35 = vld [vmem:[#allocation2 + $0x9] ss:$4 sm:$0xff]  ;;  %v587_v42 = vld [vmem:[#allocation2 + $0xa] ss:$4 sm:$0xff] }
  0x21   : > { %v462_v36 = vld [vmem:[%s3297_s23 + $0xf0] sm:$0xff]  ;;  %v463_v37 = vld [vmem:[%s3297_s23 + $0xf8] sm:$0xff]  ;;  %v456_v38 = vld [vmem:[%s3297_s23 + $0xc0] sm:$0xff] }
  0x22   : > { %670 = vrot.lane.b32.xlu1 %v535_v30, %s3192_s24  ;;  %624 = vrot.lane.b32.xlu0 %v517_v31, %s3193_s25  ;;  %494 = vst.msk [vmem:[#allocation2 + $0xf8] sm:$0xff] %vm388_vm0, %v462_v36  ;;  %495 = vst.msk [vmem:[#allocation2 + $0x100] sm:$0xff] %vm388_vm0, %v463_v37  ;;  %v457_v39 = vld [vmem:[%s3297_s23 + $0xc8] sm:$0xff]  ;;  %v458_v40 = vld [vmem:[%s3297_s23 + $0xd0] sm:$0xff] }
  0x23   : > { %488 = vst.msk [vmem:[#allocation2 + $0xc8] sm:$0xff] %vm388_vm0, %v456_v38  ;;  %489 = vst.msk [vmem:[#allocation2 + $0xd0] sm:$0xff] %vm388_vm0, %v457_v39  ;;  %v497_v43 = vld [vmem:[#allocation2 + $0x5] ss:$4 sm:$0xff]  ;;  %v521_v50 = vld [vmem:[#allocation2 + $0x66] ss:$4 sm:$0xff] }
  0x24   : > { %490 = vst.msk [vmem:[#allocation2 + $0xd8] sm:$0xff] %vm388_vm0, %v458_v40  ;;  %604 = vst.msk [vmem:[#allocation7] sm:$0xff] %vm388_vm0, %v497_v43  ;;  %v499_v44 = vld [vmem:[#allocation2 + $0x25] ss:$4 sm:$0xff]  ;;  %v519_v51 = vld [vmem:[#allocation2 + $0x46] ss:$4 sm:$0xff] }
  0x25   : > { %v503_v46 = vld [vmem:[#allocation2 + $0x65] ss:$4 sm:$0xff]  ;;  %605 = vst.msk [vmem:[#allocation7 + $0x8] sm:$0xff] %vm388_vm0, %v499_v44  ;;  %v539_v52 = vld [vmem:[#allocation2 + $0x67] ss:$4 sm:$0xff] }
  0x26   : > { %716 = vrot.lane.b32.xlu1 %v553_v32, %s3194_s26  ;;  %714 = vrot.lane.b32.xlu0 %v551_v33, %s3194_s26  ;;  %607 = vst.msk [vmem:[#allocation7 + $0x18] sm:$0xff] %vm388_vm0, %v503_v46  ;;  %v501_v47 = vld [vmem:[#allocation2 + $0x45] ss:$4 sm:$0xff]  ;;  %v537_v53 = vld [vmem:[#allocation2 + $0x47] ss:$4 sm:$0xff] }
  0x27   : > { %606 = vst.msk [vmem:[#allocation7 + $0x10] sm:$0xff] %vm388_vm0, %v501_v47  ;;  %v557_v54 = vld [vmem:[#allocation2 + $0x68] ss:$4 sm:$0xff]  ;;  %v507_v55 = vld [vmem:[#allocation2 + $0xa5] ss:$4 sm:$0xff] }
  0x28   : > { %v555_v56 = vld [vmem:[#allocation2 + $0x48] ss:$4 sm:$0xff]  ;;  %609 = vst.msk [vmem:[#allocation7 + $0x28] sm:$0xff] %vm388_vm0, %v507_v55  ;;  %v505_v57 = vld [vmem:[#allocation2 + $0x85] ss:$4 sm:$0xff] }
  0x29   : > { %608 = vst.msk [vmem:[#allocation7 + $0x20] sm:$0xff] %vm388_vm0, %v505_v57  ;;  %v575_v58 = vld [vmem:[#allocation2 + $0x69] ss:$4 sm:$0xff]  ;;  %v593_v60 = vld [vmem:[#allocation2 + $0x6a] ss:$4 sm:$0xff] }
  0x2a   : > { %762 = vrot.lane.b32.xlu1 %v571_v34, %s3195_s27  ;;  %760 = vrot.lane.b32.xlu0 %v569_v35, %s3195_s27  ;;  %v573_v59 = vld [vmem:[#allocation2 + $0x49] ss:$4 sm:$0xff]  ;;  %v591_v61 = vld [vmem:[#allocation2 + $0x4a] ss:$4 sm:$0xff]  ;;  %v543_v1 = vld [vmem:[#allocation2 + $0xa7] ss:$4 sm:$0xff] }
  0x2b   : > { %v525_v62 = vld [vmem:[#allocation2 + $0xa6] ss:$4 sm:$0xff]  ;;  %v541_v2 = vld [vmem:[#allocation2 + $0x87] ss:$4 sm:$0xff]  ;;  %v561_v3 = vld [vmem:[#allocation2 + $0xa8] ss:$4 sm:$0xff] }
  0x2c   : > { %v523_v63 = vld [vmem:[#allocation2 + $0x86] ss:$4 sm:$0xff]  ;;  %v511_v4 = vld [vmem:[#allocation2 + $0xe5] ss:$4 sm:$0xff]  ;;  %v559_v5 = vld [vmem:[#allocation2 + $0x88] ss:$4 sm:$0xff] }
  0x2d   : > { %611 = vst.msk [vmem:[#allocation7 + $0x38] sm:$0xff] %vm388_vm0, %v511_v4  ;;  %v509_v6 = vld [vmem:[#allocation2 + $0xc5] ss:$4 sm:$0xff]  ;;  %v597_v9 = vld [vmem:[#allocation2 + $0xaa] ss:$4 sm:$0xff] }
  0x2e   : > { %808 = vrot.lane.b32.xlu1 %v589_v41, %s3197_s13  ;;  %806 = vrot.lane.b32.xlu0 %v587_v42, %s3197_s13  ;;  %610 = vst.msk [vmem:[#allocation7 + $0x30] sm:$0xff] %vm388_vm0, %v509_v6  ;;  %v579_v7 = vld [vmem:[#allocation2 + $0xa9] ss:$4 sm:$0xff]  ;;  %v595_v10 = vld [vmem:[#allocation2 + $0x8a] ss:$4 sm:$0xff] }
  0x2f   : > { %v577_v8 = vld [vmem:[#allocation2 + $0x89] ss:$4 sm:$0xff]  ;;  %v529_v11 = vld [vmem:[#allocation2 + $0xe6] ss:$4 sm:$0xff]  ;;  %v547_v13 = vld [vmem:[#allocation2 + $0xe7] ss:$4 sm:$0xff] }
  0x30   : > { %v527_v12 = vld [vmem:[#allocation2 + $0xc6] ss:$4 sm:$0xff]  ;;  %v545_v14 = vld [vmem:[#allocation2 + $0xc7] ss:$4 sm:$0xff]  ;;  %v565_v15 = vld [vmem:[#allocation2 + $0xe8] ss:$4 sm:$0xff] }
  0x31   : > { %v513_v16 = vld [vmem:[#allocation2 + $0x105] ss:$4 sm:$0xff]  ;;  %v563_v17 = vld [vmem:[#allocation2 + $0xc8] ss:$4 sm:$0xff]  ;;  %v601_v20 = vld [vmem:[#allocation2 + $0xea] ss:$4 sm:$0xff] }
  0x32   : > { %628 = vrot.lane.b32.xlu1 %v521_v50, %s3193_s25  ;;  %626 = vrot.lane.b32.xlu0 %v519_v51, %s3193_s25  ;;  %612 = vst.msk [vmem:[#allocation7 + $0x40] sm:$0xff] %vm388_vm0, %v513_v16  ;;  %v583_v18 = vld [vmem:[#allocation2 + $0xe9] ss:$4 sm:$0xff]  ;;  %v599_v21 = vld [vmem:[#allocation2 + $0xca] ss:$4 sm:$0xff] }
  0x33   : > { %v581_v19 = vld [vmem:[#allocation2 + $0xc9] ss:$4 sm:$0xff]  ;;  %v531_v22 = vld [vmem:[#allocation2 + $0x106] ss:$4 sm:$0xff]  ;;  %v549_v23 = vld [vmem:[#allocation2 + $0x107] ss:$4 sm:$0xff] }
  0x34   : > { %v567_v24 = vld [vmem:[#allocation2 + $0x108] ss:$4 sm:$0xff]  ;;  %v585_v25 = vld [vmem:[#allocation2 + $0x109] ss:$4 sm:$0xff]  ;;  %v603_v26 = vld [vmem:[#allocation2 + $0x10a] ss:$4 sm:$0xff] }
  0x36   : > { %674 = vrot.lane.b32.xlu1 %v539_v52, %s3192_s24  ;;  %672 = vrot.lane.b32.xlu0 %v537_v53, %s3192_s24 }
  0x3a   : > { %720 = vrot.lane.b32.xlu1 %v557_v54, %s3194_s26  ;;  %718 = vrot.lane.b32.xlu0 %v555_v56, %s3194_s26 }
  0x3e   : > { %766 = vrot.lane.b32.xlu1 %v575_v58, %s3195_s27  ;;  %764 = vrot.lane.b32.xlu0 %v573_v59, %s3195_s27 }
  0x42   : > { %812 = vrot.lane.b32.xlu1 %v593_v60, %s3197_s13  ;;  %810 = vrot.lane.b32.xlu0 %v591_v61, %s3197_s13 }
  0x46   : > { %632 = vrot.lane.b32.xlu1 %v525_v62, %s3193_s25  ;;  %630 = vrot.lane.b32.xlu0 %v523_v63, %s3193_s25 }
  0x4a   : > { %678 = vrot.lane.b32.xlu1 %v543_v1, %s3192_s24  ;;  %676 = vrot.lane.b32.xlu0 %v541_v2, %s3192_s24 }
  0x4e   : > { %724 = vrot.lane.b32.xlu1 %v561_v3, %s3194_s26  ;;  %722 = vrot.lane.b32.xlu0 %v559_v5, %s3194_s26 }
  0x52   : > { %770 = vrot.lane.b32.xlu1 %v579_v7, %s3195_s27  ;;  %768 = vrot.lane.b32.xlu0 %v577_v8, %s3195_s27  ;;  %v3468_v8 = vld [vmem:[#allocation3] sm:$0xff] }
  0x56   : > { %816 = vrot.lane.b32.xlu1 %v597_v9, %s3197_s13  ;;  %814 = vrot.lane.b32.xlu0 %v595_v10, %s3197_s13 }
  0x5a   : > { %636 = vrot.lane.b32.xlu1 %v529_v11, %s3193_s25  ;;  %634 = vrot.lane.b32.xlu0 %v527_v12, %s3193_s25 }
  0x5e   : > { %682 = vrot.lane.b32.xlu1 %v547_v13, %s3192_s24  ;;  %680 = vrot.lane.b32.xlu0 %v545_v14, %s3192_s24 }
  0x62   : > { %728 = vrot.lane.b32.xlu1 %v565_v15, %s3194_s26  ;;  %726 = vrot.lane.b32.xlu0 %v563_v17, %s3194_s26 }
  0x66   : > { %774 = vrot.lane.b32.xlu1 %v583_v18, %s3195_s27  ;;  %772 = vrot.lane.b32.xlu0 %v581_v19, %s3195_s27 }
  0x6a   : > { %820 = vrot.lane.b32.xlu1 %v601_v20, %s3197_s13  ;;  %818 = vrot.lane.b32.xlu0 %v599_v21, %s3197_s13 }
  0x6e   : > { %638 = vrot.lane.b32.xlu0 %v531_v22, %s3193_s25  ;;  %684 = vrot.lane.b32.xlu1 %v549_v23, %s3192_s24  ;;  %v3038_v23 = vld [vmem:[%s3940_s3 + $0x40] sm:$0xff]  }
  0x6f   : > { %2783 = vmatprep.subr.bf16.mxu1 %v3038_v23 }
  0x72   : > { %730 = vrot.lane.b32.xlu0 %v567_v24, %s3194_s26  ;;  %776 = vrot.lane.b32.xlu1 %v585_v25, %s3195_s27  ;;  %v3039_v24 = vld [vmem:[%s3940_s3 + $0xc0] sm:$0xff]   ;;  %s2775_s27 = sshll.u32 %s3951_s18, 4 }
  0x73   : > { %v3040_v25 = vld [vmem:[%s3940_s3] sm:$0xff]   ;;  %2817 = vmatprep.subr.bf16.mxu0 %v3039_v24  ;;  %s386_s30 = scalar_lea.vmem %s3948_s11, %s2775_s27 }
  0x76   : > { %822 = vrot.lane.b32.xlu0 %v603_v26, %s3197_s13  ;;  %v3041_v26 = vld [vmem:[%s3940_s3 + $0x80] sm:$0xff]  }
  0x77   : > { %2818 = vmatpush3.bf16.msra.mxu0 %v3041_v26 }
  0x90   : > { %v669_v27 = vpop.permute.xlu1 %668  ;;  %v623_v28 = vpop.permute.xlu0 %622 }
  0x91   : > { %650 = vst.msk [vmem:[#allocation7] sm:$0xff] %vm649_vm3, %v623_v28  ;;  %v3043_v28 = vld [vmem:[%s3940_s3 + $0xc8] sm:$0xff]  }
  0x92   : > { %696 = vst.msk [vmem:[#allocation7] sm:$0xff] %vm695_vm4, %v669_v27  ;;  %v3042_v27 = vld [vmem:[%s3940_s3 + $0x48] sm:$0xff]   ;;  %2819 = vmatprep.subr.bf16.mxu0 %v3043_v28 }
  0x94   : > { %v671_v29 = vpop.permute.xlu1 %670  ;;  %v625_v30 = vpop.permute.xlu0 %624 }
  0x95   : > { %651 = vst.msk [vmem:[#allocation7 + $0x8] sm:$0xff] %vm649_vm3, %v625_v30  ;;  %v3045_v30 = vld [vmem:[%s3940_s3 + $0x88] sm:$0xff]  }
  0x96   : > { %697 = vst.msk [vmem:[#allocation7 + $0x8] sm:$0xff] %vm695_vm4, %v671_v29  ;;  %v3044_v29 = vld [vmem:[%s3940_s3 + $0x8] sm:$0xff]   ;;  %2820 = vmatpush3.bf16.msra.mxu0 %v3045_v30  ;;  %v3072_v30 = vld [vmem:[%s3940_s3 + $0x110] sm:$0xff]  }
  0x98   : > { %v717_v31 = vpop.permute.xlu1 %716  ;;  %v715_v32 = vpop.permute.xlu0 %714 }
  0x99   : > { %743 = vst.msk [vmem:[#allocation7 + $0x8] sm:$0xff] %vm741_vm5, %v717_v31  ;;  %742 = vst.msk [vmem:[#allocation7] sm:$0xff] %vm741_vm5, %v715_v32  ;;  %v3046_v31 = vld [vmem:[%s3940_s3 + $0x50] sm:$0xff]  }
  0x9a   : > { %v3047_v32 = vld [vmem:[%s3940_s3 + $0xd0] sm:$0xff]  }
  0x9b   : > { %2821 = vmatprep.subr.bf16.mxu0 %v3047_v32  ;;  %v3073_v32 = vld [vmem:[%s3940_s3 + $0x118] sm:$0xff]  }
  0x9c   : > { %v763_v33 = vpop.permute.xlu1 %762  ;;  %v761_v34 = vpop.permute.xlu0 %760 }
  0x9d   : > { %789 = vst.msk [vmem:[#allocation7 + $0x8] sm:$0xff] %vm787_vm6, %v763_v33  ;;  %788 = vst.msk [vmem:[#allocation7] sm:$0xff] %vm787_vm6, %v761_v34  ;;  %v3048_v33 = vld [vmem:[%s3940_s3 + $0x10] sm:$0xff]  }
  0x9e   : > { %v3049_v34 = vld [vmem:[%s3940_s3 + $0x90] sm:$0xff]  }
  0x9f   : > { %2822 = vmatpush3.bf16.msra.mxu0 %v3049_v34  ;;  %v3075_v34 = vld [vmem:[%s3940_s3 + $0x128] sm:$0xff]  }
  0xa0   : > { %v809_v35 = vpop.permute.xlu1 %808  ;;  %v807_v36 = vpop.permute.xlu0 %806 }
  0xa1   : > { %835 = vst.msk [vmem:[#allocation7 + $0x8] sm:$0xff] %vm833_vm7, %v809_v35  ;;  %834 = vst.msk [vmem:[#allocation7] sm:$0xff] %vm833_vm7, %v807_v36  ;;  %v3050_v35 = vld [vmem:[%s3940_s3 + $0x58] sm:$0xff]  }
  0xa2   : > { %v3051_v36 = vld [vmem:[%s3940_s3 + $0xd8] sm:$0xff]  }
  0xa3   : > { %2823 = vmatprep.subr.bf16.mxu0 %v3051_v36 }
  0xa4   : > { %v629_v37 = vpop.permute.xlu1 %628  ;;  %v627_v38 = vpop.permute.xlu0 %626 }
  0xa5   : > { %653 = vst.msk [vmem:[#allocation7 + $0x18] sm:$0xff] %vm649_vm3, %v629_v37  ;;  %652 = vst.msk [vmem:[#allocation7 + $0x10] sm:$0xff] %vm649_vm3, %v627_v38  ;;  %v3052_v37 = vld [vmem:[%s3940_s3 + $0x18] sm:$0xff]  }
  0xa6   : > { %v3053_v38 = vld [vmem:[%s3940_s3 + $0x98] sm:$0xff]  }
  0xa7   : > { %2824 = vmatpush3.bf16.msra.mxu0 %v3053_v38 }
  0xa8   : > { %v675_v39 = vpop.permute.xlu1 %674  ;;  %v673_v40 = vpop.permute.xlu0 %672  ;;  %v843_v41 = vld [vmem:[#allocation7] sm:$0xff]  ;;  %v844_v42 = vld [vmem:[#allocation7 + $0x8] sm:$0xff] }
  0xa9   : > { %699 = vst.msk [vmem:[#allocation7 + $0x18] sm:$0xff] %vm695_vm4, %v675_v39  ;;  %698 = vst.msk [vmem:[#allocation7 + $0x10] sm:$0xff] %vm695_vm4, %v673_v40  ;;  %v852_v43 = vpack.c.bf16 %v844_v42, %v843_v41  ;;  %v3054_v39 = vld [vmem:[%s3940_s3 + $0x60] sm:$0xff]  }
  0xaa   : > { %v3055_v40 = vld [vmem:[%s3940_s3 + $0xe0] sm:$0xff]  }
  0xab   : > { %2954 = vmatmul.mubr.msk.bf16.vlgmr.msra.gmra.mrb[0].mxu1 %vm876_vm8, %v852_v43  ;;  %v3056_v41 = vld [vmem:[%s3940_s3 + $0x20] sm:$0xff]   ;;  %2825 = vmatprep.subr.bf16.mxu0 %v3055_v40  ;;  %v3058_v43 = vld [vmem:[%s3940_s3 + $0x68] sm:$0xff]   ;;  %v402_v40 = vlaneseq }
  0xac   : > { %v721_v44 = vpop.permute.xlu1 %720  ;;  %v719_v45 = vpop.permute.xlu0 %718  ;;  %2957 = vmatprep.mubr.msk.bf16.mxu1 %vm3196_vm2, %v3191_v0  ;;  %2784 = vmatpush3.bf16.msra.mxu1 %v3040_v25  ;;  %v3057_v42 = vld [vmem:[%s3940_s3 + $0xa0] sm:$0xff]  }
  0xad   : > { %745 = vst.msk [vmem:[#allocation7 + $0x18] sm:$0xff] %vm741_vm5, %v721_v44  ;;  %744 = vst.msk [vmem:[#allocation7 + $0x10] sm:$0xff] %vm741_vm5, %v719_v45  ;;  %2785 = vmatprep.subr.bf16.mxu1 %v3042_v27  ;;  %2826 = vmatpush3.bf16.msra.mxu0 %v3057_v42  ;;  %v3059_v44 = vld [vmem:[%s3940_s3 + $0xe8] sm:$0xff]  }
  0xae   : > { %v3060_v45 = vld [vmem:[%s3940_s3 + $0x28] sm:$0xff]   ;;  %2827 = vmatprep.subr.bf16.mxu0 %v3059_v44  ;;  %v3077_v44 = vld [vmem:[%s3940_s3 + $0x138] sm:$0xff]  }
  0xb0   : > { %v767_v46 = vpop.permute.xlu1 %766  ;;  %v765_v47 = vpop.permute.xlu0 %764  ;;  %2786 = vmatpush3.bf16.msra.mxu1 %v3044_v29 }
  0xb1   : > { %791 = vst.msk [vmem:[#allocation7 + $0x18] sm:$0xff] %vm787_vm6, %v767_v46  ;;  %790 = vst.msk [vmem:[#allocation7 + $0x10] sm:$0xff] %vm787_vm6, %v765_v47  ;;  %2787 = vmatprep.subr.bf16.mxu1 %v3046_v31  ;;  %v3061_v46 = vld [vmem:[%s3940_s3 + $0xa8] sm:$0xff]   ;;  %v3062_v47 = vld [vmem:[%s3940_s3 + $0x70] sm:$0xff]  }
  0xb2   : > { %2828 = vmatpush3.bf16.msra.mxu0 %v3061_v46  ;;  %v3628_v46 = vshrl.u32 %v402_v40, 7  ;;  %v3098_v40 = vld [vmem:[%s3942_s5 + $0x68] sm:$0xff]  }
  0xb4   : > { %v813_v48 = vpop.permute.xlu1 %812  ;;  %v811_v49 = vpop.permute.xlu0 %810  ;;  %2788 = vmatpush3.bf16.msra.mxu1 %v3048_v33  ;;  %v3074_v33 = vld [vmem:[%s3940_s3 + $0x120] sm:$0xff]   ;;  %vm431_vm13 = vcmp.lt.s32.totalorder %v3628_v46, 5 }
  0xb5   : > { %837 = vst.msk [vmem:[#allocation7 + $0x18] sm:$0xff] %vm833_vm7, %v813_v48  ;;  %836 = vst.msk [vmem:[#allocation7 + $0x10] sm:$0xff] %vm833_vm7, %v811_v49  ;;  %2789 = vmatprep.subr.bf16.mxu1 %v3050_v35  ;;  %v3063_v48 = vld [vmem:[%s3940_s3 + $0xf0] sm:$0xff]  }
  0xb6   : > { %v3064_v49 = vld [vmem:[%s3940_s3 + $0x30] sm:$0xff]   ;;  %2829 = vmatprep.subr.bf16.mxu0 %v3063_v48 }
  0xb7   : > { %v3076_v35 = vld [vmem:[%s3940_s3 + $0x130] sm:$0xff]  }
  0xb8   : > { %v633_v50 = vpop.permute.xlu1 %632  ;;  %v631_v51 = vpop.permute.xlu0 %630  ;;  %2790 = vmatpush3.bf16.msra.mxu1 %v3052_v37 }
  0xb9   : > { %655 = vst.msk [vmem:[#allocation7 + $0x28] sm:$0xff] %vm649_vm3, %v633_v50  ;;  %654 = vst.msk [vmem:[#allocation7 + $0x20] sm:$0xff] %vm649_vm3, %v631_v51  ;;  %2791 = vmatprep.subr.bf16.mxu1 %v3054_v39  ;;  %v3065_v50 = vld [vmem:[%s3940_s3 + $0xb0] sm:$0xff]   ;;  %v3066_v51 = vld [vmem:[%s3940_s3 + $0x78] sm:$0xff]  }
  0xba   : > { %2830 = vmatpush3.bf16.msra.mxu0 %v3065_v50 }
  0xbc   : > { %v679_v52 = vpop.permute.xlu1 %678  ;;  %v677_v53 = vpop.permute.xlu0 %676  ;;  %v845_v54 = vld [vmem:[#allocation7 + $0x10] sm:$0xff]  ;;  %v846_v55 = vld [vmem:[#allocation7 + $0x18] sm:$0xff]  ;;  %2792 = vmatpush3.bf16.msra.mxu1 %v3056_v41 }
  0xbd   : > { %701 = vst.msk [vmem:[#allocation7 + $0x28] sm:$0xff] %vm695_vm4, %v679_v52  ;;  %700 = vst.msk [vmem:[#allocation7 + $0x20] sm:$0xff] %vm695_vm4, %v677_v53  ;;  %v853_v56 = vpack.c.bf16 %v846_v55, %v845_v54  ;;  %2793 = vmatprep.subr.bf16.mxu1 %v3058_v43  ;;  %v3067_v52 = vld [vmem:[%s3940_s3 + $0xf8] sm:$0xff]   ;;  %v3587_v55 = vld [vmem:[%s3939_s2] ss:$0 sm:$0xff] }
  0xbe   : > { %v3068_v53 = vld [vmem:[%s3940_s3 + $0x38] sm:$0xff]   ;;  %2831 = vmatprep.subr.bf16.mxu0 %v3067_v52 }
  0xbf   : > { %2958 = vmatmul.mubr.msk.bf16.gmra.mrb[4].mxu1 %vm876_vm8, %v853_v56  ;;  %v3069_v54 = vld [vmem:[%s3940_s3 + $0xb8] sm:$0xff]  }
  0xc0   : > { %v725_v57 = vpop.permute.xlu1 %724  ;;  %v723_v58 = vpop.permute.xlu0 %722  ;;  %2961 = vmatprep.mubr.msk.bf16.mxu1 %vm3196_vm2, %v3191_v0  ;;  %2794 = vmatpush3.bf16.msra.mxu1 %v3060_v45 }
  0xc1   : > { %747 = vst.msk [vmem:[#allocation7 + $0x28] sm:$0xff] %vm741_vm5, %v725_v57  ;;  %746 = vst.msk [vmem:[#allocation7 + $0x20] sm:$0xff] %vm741_vm5, %v723_v58  ;;  %2795 = vmatprep.subr.bf16.mxu1 %v3062_v47  ;;  %2832 = vmatpush3.bf16.msra.mxu0 %v3069_v54  ;;  %v411_v47 = vadd.s32 64, %v3628_v46 }
  0xc3   : > { %vm420_vm9 = vcmp.lt.s32.totalorder %v411_v47, 65  ;;  %v3104_v47 = vld [vmem:[%s3942_s5 + $0x30] sm:$0xff]  }
  0xc4   : > { %v771_v59 = vpop.permute.xlu1 %770  ;;  %v769_v60 = vpop.permute.xlu0 %768  ;;  %2796 = vmatpush3.bf16.msra.mxu1 %v3064_v49 }
  0xc5   : > { %793 = vst.msk [vmem:[#allocation7 + $0x28] sm:$0xff] %vm787_vm6, %v771_v59  ;;  %792 = vst.msk [vmem:[#allocation7 + $0x20] sm:$0xff] %vm787_vm6, %v769_v60  ;;  %2797 = vmatprep.subr.bf16.mxu1 %v3066_v51 }
  0xc8   : > { %v817_v61 = vpop.permute.xlu1 %816  ;;  %v815_v62 = vpop.permute.xlu0 %814  ;;  %2798 = vmatpush3.bf16.msra.mxu1 %v3068_v53 }
  0xc9   : > { %839 = vst.msk [vmem:[#allocation7 + $0x28] sm:$0xff] %vm833_vm7, %v817_v61  ;;  %838 = vst.msk [vmem:[#allocation7 + $0x20] sm:$0xff] %vm833_vm7, %v815_v62  ;;  %2973 = vmatprep.subr.bf16.mxu1 %v3468_v8 }
  0xcc   : > { %v637_v63 = vpop.permute.xlu1 %636  ;;  %v635_v1 = vpop.permute.xlu0 %634 }
  0xcd   : > { %657 = vst.msk [vmem:[#allocation7 + $0x38] sm:$0xff] %vm649_vm3, %v637_v63  ;;  %656 = vst.msk [vmem:[#allocation7 + $0x30] sm:$0xff] %vm649_vm3, %v635_v1 }
  0xd0   : > { %v683_v0 = vpop.permute.xlu1 %682  ;;  %v681_v2 = vpop.permute.xlu0 %680  ;;  %v847_v3 = vld [vmem:[#allocation7 + $0x20] sm:$0xff]  ;;  %v848_v4 = vld [vmem:[#allocation7 + $0x28] sm:$0xff] }
  0xd1   : > { %703 = vst.msk [vmem:[#allocation7 + $0x38] sm:$0xff] %vm695_vm4, %v683_v0  ;;  %702 = vst.msk [vmem:[#allocation7 + $0x30] sm:$0xff] %vm695_vm4, %v681_v2  ;;  %v854_v5 = vpack.c.bf16 %v848_v4, %v847_v3 }
  0xd3   : > { %2962 = vmatmul.mubr.msk.bf16.gmra.mrb[8].mxu1 %vm876_vm8, %v854_v5 }
  0xd4   : > { %v729_v6 = vpop.permute.xlu1 %728  ;;  %v727_v7 = vpop.permute.xlu0 %726  ;;  %2965 = vmatprep.mubr.msk.bf16.mxu1 %vm3196_vm2, %v3468_v8 }
  0xd5   : > { %749 = vst.msk [vmem:[#allocation7 + $0x38] sm:$0xff] %vm741_vm5, %v729_v6  ;;  %748 = vst.msk [vmem:[#allocation7 + $0x30] sm:$0xff] %vm741_vm5, %v727_v7 }
  0xd8   : > { %v775_v9 = vpop.permute.xlu1 %774  ;;  %v773_v10 = vpop.permute.xlu0 %772 }
  0xd9   : > { %795 = vst.msk [vmem:[#allocation7 + $0x38] sm:$0xff] %vm787_vm6, %v775_v9  ;;  %794 = vst.msk [vmem:[#allocation7 + $0x30] sm:$0xff] %vm787_vm6, %v773_v10 }
  0xdc   : > { %v821_v11 = vpop.permute.xlu1 %820  ;;  %v819_v12 = vpop.permute.xlu0 %818 }
  0xdd   : > { %841 = vst.msk [vmem:[#allocation7 + $0x38] sm:$0xff] %vm833_vm7, %v821_v11  ;;  %840 = vst.msk [vmem:[#allocation7 + $0x30] sm:$0xff] %vm833_vm7, %v819_v12 }
  0xe0   : > { %v639_v13 = vpop.permute.xlu0 %638  ;;  %v685_v14 = vpop.permute.xlu1 %684 }
  0xe1   : > { %658 = vst.msk [vmem:[#allocation7 + $0x40] sm:$0xff] %vm649_vm3, %v639_v13 }
  0xe2   : > { %704 = vst.msk [vmem:[#allocation7 + $0x40] sm:$0xff] %vm695_vm4, %v685_v14 }
  0xe4   : > { %v731_v15 = vpop.permute.xlu0 %730  ;;  %v777_v16 = vpop.permute.xlu1 %776  ;;  %v849_v17 = vld [vmem:[#allocation7 + $0x30] sm:$0xff]  ;;  %v850_v18 = vld [vmem:[#allocation7 + $0x38] sm:$0xff] }
  0xe5   : > { %750 = vst.msk [vmem:[#allocation7 + $0x40] sm:$0xff] %vm741_vm5, %v731_v15  ;;  %v855_v19 = vpack.c.bf16 %v850_v18, %v849_v17 }
  0xe6   : > { %796 = vst.msk [vmem:[#allocation7 + $0x40] sm:$0xff] %vm787_vm6, %v777_v16 }
  0xe7   : > { %2966 = vmatmul.mubr.msk.bf16.gmra.mrb[12].mxu1 %vm876_vm8, %v855_v19 }
  0xe8   : > { %v823_v20 = vpop.permute.xlu0 %822  ;;  %2969 = vmatprep.mubr.msk.bf16.mxu1 %vm3196_vm2, %v3468_v8 }
  0xe9   : > { %842 = vst.msk [vmem:[#allocation7 + $0x40] sm:$0xff] %vm833_vm7, %v823_v20  ;;  %v3070_v20 = vld [vmem:[%s3940_s3 + $0x100] sm:$0xff]  }
  0xf0   : > { %v851_v21 = vld [vmem:[#allocation7 + $0x40] sm:$0xff] }
  0xf1   : > { %v856_v22 = vpack.c.bf16 %v851_v21, %v851_v21 }
  0xf3   : > { %2970 = vmatmul.mubr.msk.bf16.gmra.mrb[16].mxu1 %vm876_vm8, %v856_v22  ;;  %v3071_v22 = vld [vmem:[%s3940_s3 + $0x108] sm:$0xff]  }
 0x17e   : > { %v930_v56 = vpop.f32.mrb[0].mxu1 }
 0x17f   : > { %v931_v57 = vadd.f32 %v3587_v55, %v930_v56  ;;  %v2955_v58 = vpop.f32.mrb[1].mxu1 }
 0x180   : > { %v933_v59 = vpop.f32.mrb[2].mxu1 }
 0x181   : > { %v968_v60 = vmax.f32 %v931_v57, 0.0  ;;  %v934_v61 = vadd.f32 %v3587_v55, %v933_v59  ;;  %v2956_v62 = vpop.f32.mrb[3].mxu1 }
 0x183   : > { %1004 = vst [vmem:[#allocation3 + $0x8] sm:$0xff] %v968_v60  ;;  %v969_v63 = vmax.f32 %v934_v61, 0.0 }
 0x185   : > { %1005 = vst [vmem:[#allocation3 + $0x10] sm:$0xff] %v969_v63 }
 0x18c   : > { %v1024_v9 = vld [vmem:[#allocation3 + $0x7] ss:$2 sm:$0xff]  ;;  %v1014_v11 = vld [vmem:[#allocation3 + $0x6] ss:$2 sm:$0xff] }
 0x18d   : > { %v1044_v10 = vld [vmem:[#allocation3 + $0x9] ss:$2 sm:$0xff]  ;;  %v1034_v18 = vld [vmem:[#allocation3 + $0x8] ss:$2 sm:$0xff] }
 0x192   : > { %v938_v1 = vpop.f32.mrb[4].mxu1 }
 0x193   : > { %v939_v0 = vadd.f32 %v3587_v55, %v938_v1  ;;  %v2959_v2 = vpop.f32.mrb[5].mxu1 }
 0x194   : > { %v941_v3 = vpop.f32.mrb[6].mxu1 }
 0x195   : > { %v970_v4 = vmax.f32 %v939_v0, 0.0  ;;  %v942_v5 = vadd.f32 %v3587_v55, %v941_v3  ;;  %v2960_v6 = vpop.f32.mrb[7].mxu1 }
 0x197   : > { %1006 = vst [vmem:[#allocation3 + $0x18] sm:$0xff] %v970_v4  ;;  %v971_v7 = vmax.f32 %v942_v5, 0.0 }
 0x199   : > { %1007 = vst [vmem:[#allocation3 + $0x20] sm:$0xff] %v971_v7 }
 0x1a0   : > { %v1026_v12 = vld [vmem:[#allocation3 + $0x17] ss:$2 sm:$0xff]  ;;  %v1016_v14 = vld [vmem:[#allocation3 + $0x16] ss:$2 sm:$0xff] }
 0x1a1   : > { %v1046_v13 = vld [vmem:[#allocation3 + $0x19] ss:$2 sm:$0xff]  ;;  %v1064_v15 = vpack.c.bf16 %v1026_v12, %v1024_v9  ;;  %v1063_v17 = vpack.c.bf16 %v1016_v14, %v1014_v11  ;;  %v1036_v19 = vld [vmem:[#allocation3 + $0x18] ss:$2 sm:$0xff] }
 0x1a2   : > { %v1066_v16 = vpack.c.bf16 %v1046_v13, %v1044_v10  ;;  %v1065_v21 = vpack.c.bf16 %v1036_v19, %v1034_v18  ;;  %v1054_v13 = vld [vmem:[#allocation3 + $0xa] ss:$2 sm:$0xff] }
 0x1a3   : > { %1437 = vmatprep.mubr.bf16.mxu1 %v1064_v15 }
 0x1a4   : > { %1493 = vmatprep.mubr.bf16.mxu0 %v1066_v16  ;;  %1438 = vmatmul.mubr.bf16.vlgmr.msra.gmra.mrb[20].mxu1 %v1063_v17 }
 0x1a5   : > { %1494 = vmatmul.mubr.bf16.vlgmr.msra.gmra.mrb[0].mxu0 %v1065_v21  ;;  %2974 = vmatpush3.bf16.msra.mxu1 %v3070_v20  ;;  %v3078_v20 = vld [vmem:[%s3942_s5 + $0x40] sm:$0xff]  }
 0x1a6   : > { %v946_v23 = vpop.f32.mrb[8].mxu1  ;;  %2975 = vmatprep.subr.bf16.mxu1 %v3468_v8  ;;  %v3079_v21 = vld [vmem:[%s3942_s5 + $0xc0] sm:$0xff]   ;;  %2862 = vmatprep.subr.bf16.mxu0 %v3078_v20 }
 0x1a7   : > { %v947_v24 = vadd.f32 %v3587_v55, %v946_v23  ;;  %v2963_v25 = vpop.f32.mrb[9].mxu1  ;;  %v3081_v23 = vld [vmem:[%s3942_s5 + $0x80] sm:$0xff]  }
 0x1a8   : > { %v949_v26 = vpop.f32.mrb[10].mxu1  ;;  %v3083_v25 = vld [vmem:[%s3942_s5 + $0xc8] sm:$0xff]  }
 0x1a9   : > { %v972_v27 = vmax.f32 %v947_v24, 0.0  ;;  %v950_v28 = vadd.f32 %v3587_v55, %v949_v26  ;;  %v2964_v29 = vpop.f32.mrb[11].mxu1  ;;  %2976 = vmatpush3.bf16.msra.mxu1 %v3071_v22  ;;  %v3080_v22 = vld [vmem:[%s3942_s5] sm:$0xff]   ;;  %v3082_v24 = vld [vmem:[%s3942_s5 + $0x48] sm:$0xff]  }
 0x1aa   : > { %2977 = vmatprep.subr.bf16.mxu1 %v3468_v8  ;;  %2863 = vmatpush3.bf16.msra.mxu0 %v3080_v22  ;;  %v3084_v26 = vld [vmem:[%s3942_s5 + $0x8] sm:$0xff]   ;;  %v3087_v29 = vld [vmem:[%s3942_s5 + $0xd0] sm:$0xff]  }
 0x1ab   : > { %1008 = vst [vmem:[#allocation3 + $0x28] sm:$0xff] %v972_v27  ;;  %v973_v31 = vmax.f32 %v950_v28, 0.0  ;;  %v3085_v27 = vld [vmem:[%s3942_s5 + $0x88] sm:$0xff]   ;;  %2864 = vmatprep.subr.bf16.mxu0 %v3082_v24  ;;  %v3086_v28 = vld [vmem:[%s3942_s5 + $0x50] sm:$0xff]  }
 0x1ad   : > { %1009 = vst [vmem:[#allocation3 + $0x30] sm:$0xff] %v973_v31  ;;  %2978 = vmatpush3.bf16.msra.mxu1 %v3072_v30  ;;  %v3088_v30 = vld [vmem:[%s3942_s5 + $0x10] sm:$0xff]  }
 0x1ae   : > { %2979 = vmatprep.subr.bf16.mxu1 %v3468_v8  ;;  %2865 = vmatpush3.bf16.msra.mxu0 %v3084_v26  ;;  %v3089_v31 = vld [vmem:[%s3942_s5 + $0x90] sm:$0xff]  }
 0x1af   : > { %2866 = vmatprep.subr.bf16.mxu0 %v3086_v28 }
 0x1b1   : > { %2980 = vmatpush3.bf16.msra.mxu1 %v3073_v32  ;;  %v3090_v32 = vld [vmem:[%s3942_s5 + $0x58] sm:$0xff]  }
 0x1b2   : > { %2981 = vmatprep.subr.bf16.mxu1 %v3468_v8  ;;  %v1056_v12 = vld [vmem:[#allocation3 + $0x1a] ss:$2 sm:$0xff]  ;;  %2867 = vmatpush3.bf16.msra.mxu0 %v3088_v30 }
 0x1b3   : > { %v1067_v14 = vpack.c.bf16 %v1056_v12, %v1054_v13  ;;  %2868 = vmatprep.subr.bf16.mxu0 %v3090_v32 }
 0x1b4   : > { %v1028_v49 = vld [vmem:[#allocation3 + $0x27] ss:$2 sm:$0xff]  ;;  %v1018_v53 = vld [vmem:[#allocation3 + $0x26] ss:$2 sm:$0xff] }
 0x1b5   : > { %2982 = vmatpush3.bf16.msra.mxu1 %v3074_v33  ;;  %v1048_v50 = vld [vmem:[#allocation3 + $0x29] ss:$2 sm:$0xff]  ;;  %v1038_v54 = vld [vmem:[#allocation3 + $0x28] ss:$2 sm:$0xff] }
 0x1b6   : > { %2983 = vmatprep.subr.bf16.mxu1 %v3468_v8  ;;  %v3091_v33 = vld [vmem:[%s3942_s5 + $0xd8] sm:$0xff]  }
 0x1b9   : > { %2984 = vmatpush3.bf16.msra.mxu1 %v3075_v34  ;;  %v3092_v34 = vld [vmem:[%s3942_s5 + $0x18] sm:$0xff]  }
 0x1ba   : > { %v954_v36 = vpop.f32.mrb[12].mxu1  ;;  %2985 = vmatprep.subr.bf16.mxu1 %v3468_v8  ;;  %2869 = vmatpush3.bf16.msra.mxu0 %v3092_v34 }
 0x1bb   : > { %v955_v37 = vadd.f32 %v3587_v55, %v954_v36  ;;  %v2967_v38 = vpop.f32.mrb[13].mxu1  ;;  %v3094_v36 = vld [vmem:[%s3942_s5 + $0x60] sm:$0xff]  }
 0x1bc   : > { %v957_v39 = vpop.f32.mrb[14].mxu1  ;;  %v3096_v38 = vld [vmem:[%s3942_s5 + $0x20] sm:$0xff]   ;;  %2870 = vmatprep.subr.bf16.mxu0 %v3094_v36 }
 0x1bd   : > { %v974_v41 = vmax.f32 %v955_v37, 0.0  ;;  %v958_v42 = vadd.f32 %v3587_v55, %v957_v39  ;;  %v2968_v43 = vpop.f32.mrb[15].mxu1  ;;  %2986 = vmatpush3.bf16.msra.mxu1 %v3076_v35  ;;  %v3093_v35 = vld [vmem:[%s3942_s5 + $0x98] sm:$0xff]   ;;  %v3095_v37 = vld [vmem:[%s3942_s5 + $0xe0] sm:$0xff]  }
 0x1be   : > { %2987 = vmatprep.subr.bf16.mxu1 %v3468_v8  ;;  %v3097_v39 = vld [vmem:[%s3942_s5 + $0xa0] sm:$0xff]   ;;  %2871 = vmatpush3.bf16.msra.mxu0 %v3096_v38  ;;  %v3101_v43 = vld [vmem:[%s3942_s5 + $0xa8] sm:$0xff]  }
 0x1bf   : > { %1010 = vst [vmem:[#allocation3 + $0x38] sm:$0xff] %v974_v41  ;;  %v975_v45 = vmax.f32 %v958_v42, 0.0  ;;  %v3099_v41 = vld [vmem:[%s3942_s5 + $0xe8] sm:$0xff]   ;;  %2872 = vmatprep.subr.bf16.mxu0 %v3098_v40 }
 0x1c0   : > { %v3100_v42 = vld [vmem:[%s3942_s5 + $0x28] sm:$0xff]  }
 0x1c1   : > { %1011 = vst [vmem:[#allocation3 + $0x40] sm:$0xff] %v975_v45  ;;  %2988 = vmatpush3.bf16.msra.mxu1 %v3077_v44  ;;  %v3102_v44 = vld [vmem:[%s3942_s5 + $0x70] sm:$0xff]  }
 0x1c2   : > { %2890 = vmatprep.subr.bf16.mxu1 %v3079_v21  ;;  %2873 = vmatpush3.bf16.msra.mxu0 %v3100_v42  ;;  %v3103_v45 = vld [vmem:[%s3942_s5 + $0xf0] sm:$0xff]  }
 0x1c3   : > { %2874 = vmatprep.subr.bf16.mxu0 %v3102_v44 }
 0x1c6   : > { %v962_v48 = vpop.f32.mrb[16].mxu1  ;;  %v1058_v16 = vld [vmem:[#allocation3 + $0x2a] ss:$2 sm:$0xff]  ;;  %2875 = vmatpush3.bf16.msra.mxu0 %v3104_v47 }
 0x1c7   : > { %v963_v51 = vadd.f32 %v3587_v55, %v962_v48  ;;  %v2971_v52 = vpop.f32.mrb[17].mxu1  ;;  %v3105_v48 = vld [vmem:[%s3942_s5 + $0xb0] sm:$0xff]  }
 0x1c8   : > { %v965_v56 = vpop.f32.mrb[18].mxu1  ;;  %v1030_v57 = vld [vmem:[#allocation3 + $0x37] ss:$2 sm:$0xff]  ;;  %v1020_v63 = vld [vmem:[#allocation3 + $0x36] ss:$2 sm:$0xff] }
 0x1c9   : > { %v1050_v58 = vld [vmem:[#allocation3 + $0x39] ss:$2 sm:$0xff]  ;;  %v976_v59 = vmax.f32 %v963_v51, 0.0  ;;  %v2972_v60 = vpop.f32.mrb[19].mxu1  ;;  %v1069_v61 = vpack.c.bf16 %v1030_v57, %v1028_v49  ;;  %v1040_v1 = vld [vmem:[#allocation3 + $0x38] ss:$2 sm:$0xff]  ;;  %v1068_v0 = vpack.c.bf16 %v1020_v63, %v1018_v53 }
 0x1ca   : > { %v1071_v62 = vpack.c.bf16 %v1050_v58, %v1048_v50  ;;  %v1070_v2 = vpack.c.bf16 %v1040_v1, %v1038_v54  ;;  %v3106_v49 = vld [vmem:[%s3942_s5 + $0x78] sm:$0xff]   ;;  %v3110_v53 = vld [vmem:[%s3944_s7 + $0x40] sm:$0xff]  }
 0x1cb   : > { %v1003_v3 = vsel %vm420_vm9, %v976_v59, 0.0  ;;  %1445 = vmatprep.mubr.bf16.mxu1 %v1069_v61  ;;  %v3107_v50 = vld [vmem:[%s3942_s5 + $0xf8] sm:$0xff]   ;;  %2876 = vmatprep.subr.bf16.mxu0 %v3106_v49  ;;  %v2641_v57 = vld [vmem:[%s3941_s4] ss:$0 sm:$0xff] }
 0x1cc   : > { %1501 = vmatprep.mubr.bf16.mxu0 %v1071_v62  ;;  %1012 = vst [vmem:[#allocation3 + $0x48] sm:$0xff] %v1003_v3  ;;  %1446 = vmatmul.mubr.bf16.gmra.mrb[24].mxu1 %v1068_v0  ;;  %v3108_v51 = vld [vmem:[%s3942_s5 + $0x38] sm:$0xff]  }
 0x1cd   : > { %1502 = vmatmul.mubr.bf16.gmra.mrb[4].mxu0 %v1070_v2  ;;  %v3109_v52 = vld [vmem:[%s3942_s5 + $0xb8] sm:$0xff]  }
 0x1ce   : > { %2877 = vmatpush3.bf16.msra.mxu0 %v3108_v51 }
 0x1cf   : > { %2918 = vmatprep.subr.bf16.mxu0 %v3110_v53  ;;  %v407_v53 = vadd.s32 32, %v3628_v46 }
 0x1d1   : > { %vm425_vm10 = vcmp.lt.s32.totalorder %v407_v53, 33 }
 0x1d3   : > { %v1032_v55 = vld [vmem:[#allocation3 + $0x47] ss:$2 sm:$0xff]  ;;  %v1022_v5 = vld [vmem:[#allocation3 + $0x46] ss:$2 sm:$0xff] }
 0x1d4   : > { %v1052_v4 = vld [vmem:[#allocation3 + $0x49] ss:$2 sm:$0xff]  ;;  %v1074_v6 = vpack.c.bf16 %v1032_v55, %v1032_v55  ;;  %v1073_v9 = vpack.c.bf16 %v1022_v5, %v1022_v5  ;;  %v1042_v10 = vld [vmem:[#allocation3 + $0x48] ss:$2 sm:$0xff] }
 0x1d5   : > { %v1076_v7 = vpack.c.bf16 %v1052_v4, %v1052_v4  ;;  %v1075_v11 = vpack.c.bf16 %v1042_v10, %v1042_v10  ;;  %v1060_v15 = vld [vmem:[#allocation3 + $0x3a] ss:$2 sm:$0xff]  ;;  %v1062_v18 = vld [vmem:[#allocation3 + $0x4a] ss:$2 sm:$0xff] }
 0x1d6   : > { %1453 = vmatprep.mubr.bf16.mxu1 %v1074_v6  ;;  %v1072_v17 = vpack.c.bf16 %v1060_v15, %v1058_v16  ;;  %v1077_v19 = vpack.c.bf16 %v1062_v18, %v1062_v18 }
 0x1d7   : > { %1509 = vmatprep.mubr.bf16.mxu0 %v1076_v7  ;;  %1454 = vmatmul.mubr.bf16.gmra.mrb[28].mxu1 %v1073_v9 }
 0x1d8   : > { %1510 = vmatmul.mubr.bf16.gmra.mrb[8].mxu0 %v1075_v11  ;;  %2989 = vmatprep.mubr.msk.bf16.mxu1 %vm3196_vm2, %v3468_v8 }
 0x1df   : > { %2990 = vmatmul.mubr.bf16.vlgmr.msra.gmra.mrb[32].mxu1 %v1067_v14 }
 0x1e0   : > { %2993 = vmatprep.mubr.msk.bf16.mxu1 %vm3196_vm2, %v3468_v8  ;;  %2891 = vmatpush3.bf16.msra.mxu1 %v3081_v23 }
 0x1e1   : > { %2892 = vmatprep.subr.bf16.mxu1 %v3083_v25 }
 0x1e4   : > { %2893 = vmatpush3.bf16.msra.mxu1 %v3085_v27 }
 0x1e5   : > { %2894 = vmatprep.subr.bf16.mxu1 %v3087_v29 }
 0x1e7   : > { %2994 = vmatmul.mubr.bf16.gmra.mrb[36].mxu1 %v1072_v17 }
 0x1e8   : > { %2997 = vmatprep.mubr.msk.bf16.mxu1 %vm3196_vm2, %v3468_v8  ;;  %2895 = vmatpush3.bf16.msra.mxu1 %v3089_v31 }
 0x1e9   : > { %2896 = vmatprep.subr.bf16.mxu1 %v3091_v33 }
 0x1ec   : > { %2897 = vmatpush3.bf16.msra.mxu1 %v3093_v35 }
 0x1ed   : > { %2898 = vmatprep.subr.bf16.mxu1 %v3095_v37 }
 0x1ef   : > { %2998 = vmatmul.mubr.bf16.gmra.mrb[40].mxu1 %v1077_v19 }
 0x1f0   : > { %2899 = vmatpush3.bf16.msra.mxu1 %v3097_v39 }
 0x1f1   : > { %2900 = vmatprep.subr.bf16.mxu1 %v3099_v41 }
 0x1f4   : > { %2901 = vmatpush3.bf16.msra.mxu1 %v3101_v43 }
 0x1f5   : > { %2902 = vmatprep.subr.bf16.mxu1 %v3103_v45 }
 0x1f8   : > { %2903 = vmatpush3.bf16.msra.mxu1 %v3105_v48 }
 0x1f9   : > { %2904 = vmatprep.subr.bf16.mxu1 %v3107_v50 }
 0x1fc   : > { %2905 = vmatpush3.bf16.msra.mxu1 %v3109_v52 }
 0x1fd   : > { %3001 = vmatprep.subr.bf16.mxu1 %v3468_v8 }
 0x277   : > { %v2799_v54 = vpop.f32.mrb[20].mxu1 }
 0x278   : > { %v2833_v56 = vpop.f32.mrb[0].mxu0  ;;  %v2800_v58 = vpop.f32.mrb[21].mxu1 }
 0x279   : > { %v2834_v59 = vpop.f32.mrb[1].mxu0  ;;  %v2801_v60 = vadd.f32 %v2800_v58, %v2799_v54  ;;  %v2802_v62 = vpop.f32.mrb[22].mxu1 }
 0x27a   : > { %v2835_v61 = vadd.f32 %v2834_v59, %v2833_v56  ;;  %v2836_v63 = vpop.f32.mrb[2].mxu0  ;;  %v2803_v1 = vpop.f32.mrb[23].mxu1 }
 0x27b   : > { %v2837_v0 = vpop.f32.mrb[3].mxu0  ;;  %v1440_v2 = vadd.f32 %v2801_v60, %v2641_v57  ;;  %v2804_v3 = vadd.f32 %v2803_v1, %v2802_v62 }
 0x27c   : > { %v2838_v55 = vadd.f32 %v2837_v0, %v2836_v63  ;;  %v3111_v0 = vld [vmem:[%s3944_s7 + $0x80] sm:$0xff]  }
 0x27d   : > { %v1443_v4 = vadd.f32 %v2804_v3, %v2641_v57  ;;  %v1496_v5 = vadd.f32 %v2835_v61, %v1440_v2 }
 0x27f   : > { %v1499_v6 = vadd.f32 %v2838_v55, %v1443_v4 }
 0x29f   : > { %v2805_v7 = vpop.f32.mrb[24].mxu1 }
 0x2a0   : > { %v2839_v9 = vpop.f32.mrb[4].mxu0  ;;  %v2806_v10 = vpop.f32.mrb[25].mxu1 }
 0x2a1   : > { %v2840_v11 = vpop.f32.mrb[5].mxu0  ;;  %v2807_v12 = vadd.f32 %v2806_v10, %v2805_v7  ;;  %v2808_v14 = vpop.f32.mrb[26].mxu1  ;;  %v3112_v10 = vld [vmem:[%s3944_s7] sm:$0xff]  }
 0x2a2   : > { %v2841_v13 = vadd.f32 %v2840_v11, %v2839_v9  ;;  %v2842_v15 = vpop.f32.mrb[6].mxu0  ;;  %v2809_v16 = vpop.f32.mrb[27].mxu1 }
 0x2a3   : > { %v2843_v17 = vpop.f32.mrb[7].mxu0  ;;  %v1448_v18 = vadd.f32 %v2807_v12, %v2641_v57  ;;  %v2810_v19 = vadd.f32 %v2809_v16, %v2808_v14 }
 0x2a4   : > { %v2844_v20 = vadd.f32 %v2843_v17, %v2842_v15 }
 0x2a5   : > { %v1451_v21 = vadd.f32 %v2810_v19, %v2641_v57  ;;  %v1504_v22 = vadd.f32 %v2841_v13, %v1448_v18 }
 0x2a7   : > { %v1507_v23 = vadd.f32 %v2844_v20, %v1451_v21  ;;  %v3113_v20 = vld [vmem:[%s3944_s7 + $0x48] sm:$0xff]  }
 0x2a8   : > { %v3114_v21 = vld [vmem:[%s3944_s7 + $0x88] sm:$0xff]  }
 0x2aa   : > { %v2811_v24 = vpop.f32.mrb[28].mxu1 }
 0x2ab   : > { %v2845_v25 = vpop.f32.mrb[8].mxu0  ;;  %v2812_v26 = vpop.f32.mrb[29].mxu1 }
 0x2ac   : > { %v2846_v27 = vpop.f32.mrb[9].mxu0  ;;  %v2813_v28 = vadd.f32 %v2812_v26, %v2811_v24  ;;  %v2814_v30 = vpop.f32.mrb[30].mxu1  ;;  %v3117_v24 = vld [vmem:[%s3944_s7 + $0x90] sm:$0xff]   ;;  %v3119_v26 = vld [vmem:[%s3944_s7 + $0x58] sm:$0xff]  }
 0x2ad   : > { %v2847_v29 = vadd.f32 %v2846_v27, %v2845_v25  ;;  %v2848_v31 = vpop.f32.mrb[10].mxu0  ;;  %v2815_v32 = vpop.f32.mrb[31].mxu1  ;;  %v3118_v25 = vld [vmem:[%s3944_s7 + $0x10] sm:$0xff]   ;;  %v3120_v27 = vld [vmem:[%s3944_s7 + $0x98] sm:$0xff]   ;;  %v3123_v30 = vld [vmem:[%s3944_s7 + $0xa0] sm:$0xff]  }
 0x2ae   : > { %v2849_v33 = vpop.f32.mrb[11].mxu0  ;;  %v1456_v34 = vadd.f32 %v2813_v28, %v2641_v57  ;;  %v3121_v28 = vld [vmem:[%s3944_s7 + $0x18] sm:$0xff]   ;;  %v3124_v31 = vld [vmem:[%s3944_s7 + $0x20] sm:$0xff]   ;;  %v3125_v32 = vld [vmem:[%s3944_s7 + $0x68] sm:$0xff]  }
 0x2af   : > { %v3126_v33 = vld [vmem:[%s3944_s7 + $0xa8] sm:$0xff]  }
 0x2b0   : > { %v1512_v35 = vadd.f32 %v2847_v29, %v1456_v34  ;;  %v3122_v29 = vld [vmem:[%s3944_s7 + $0x60] sm:$0xff]   ;;  %v3127_v34 = vld [vmem:[%s3944_s7 + $0x28] sm:$0xff]  }
 0x2b2   : > { %v1551_v36 = vpop.f32.mrb[32].mxu1 }
 0x2b3   : > { %v1552_v37 = vadd.f32 %v1551_v36, %v1496_v5  ;;  %v2991_v38 = vpop.f32.mrb[33].mxu1  ;;  %v3129_v36 = vld [vmem:[%s3944_s7 + $0xb0] sm:$0xff]  }
 0x2b4   : > { %v1554_v39 = vpop.f32.mrb[34].mxu1  ;;  %v3131_v38 = vld [vmem:[%s3944_s7 + $0x78] sm:$0xff]  }
 0x2b5   : > { %v1573_v40 = vmax.f32 %v1552_v37, 0.0  ;;  %v1555_v41 = vadd.f32 %v1554_v39, %v1499_v6  ;;  %v2992_v42 = vpop.f32.mrb[35].mxu1  ;;  %v3130_v37 = vld [vmem:[%s3944_s7 + $0x30] sm:$0xff]   ;;  %v3132_v39 = vld [vmem:[%s3944_s7 + $0xb8] sm:$0xff]  }
 0x2b7   : > { %1593 = vst [vmem:[#allocation4 + $0x8] sm:$0xff] %v1573_v40  ;;  %v1574_v43 = vmax.f32 %v1555_v41, 0.0  ;;  %v3133_v40 = vld [vmem:[%s3944_s7 + $0x38] sm:$0xff]   ;;  %v3136_v41 = vld [vmem:[%s3946_s9 + $0x4] ss:$8 sps:$4 sm:$0xff]  }
 0x2b9   : > { %1594 = vst [vmem:[#allocation4 + $0x10] sm:$0xff] %v1574_v43 }
 0x2ba   : > { %v1559_v44 = vpop.f32.mrb[36].mxu1 }
 0x2bb   : > { %v1560_v45 = vadd.f32 %v1559_v44, %v1504_v22  ;;  %v2995_v47 = vpop.f32.mrb[37].mxu1  ;;  %v3115_v22 = vld [vmem:[%s3944_s7 + $0x8] sm:$0xff]   ;;  %v2682_v44 = vld [vmem:[%s3943_s6] ss:$0 sm:$0xff] }
 0x2bc   : > { %v1562_v48 = vpop.f32.mrb[38].mxu1 }
 0x2bd   : > { %v1575_v49 = vmax.f32 %v1560_v45, 0.0  ;;  %v1563_v50 = vadd.f32 %v1562_v48, %v1507_v23  ;;  %v2996_v51 = vpop.f32.mrb[39].mxu1  ;;  %v3116_v23 = vld [vmem:[%s3944_s7 + $0x50] sm:$0xff]  }
 0x2bf   : > { %1595 = vst [vmem:[#allocation4 + $0x18] sm:$0xff] %v1575_v49  ;;  %v1576_v52 = vmax.f32 %v1563_v50, 0.0 }
 0x2c0   : > { %v1605_v61 = vld [vmem:[#allocation4 + $0x7] ss:$2 sm:$0xff]  ;;  %v1599_v1 = vld [vmem:[#allocation4 + $0x6] ss:$2 sm:$0xff] }
 0x2c1   : > { %1596 = vst [vmem:[#allocation4 + $0x20] sm:$0xff] %v1576_v52  ;;  %v1617_v63 = vld [vmem:[#allocation4 + $0x9] ss:$2 sm:$0xff]  ;;  %v1611_v7 = vld [vmem:[#allocation4 + $0x8] ss:$2 sm:$0xff] }
 0x2c2   : > { %v1567_v54 = vpop.f32.mrb[40].mxu1 }
 0x2c3   : > { %v1568_v56 = vadd.f32 %v1567_v54, %v1512_v35  ;;  %v2999_v57 = vpop.f32.mrb[41].mxu1  ;;  %v3128_v35 = vld [vmem:[%s3944_s7 + $0x70] sm:$0xff]  }
 0x2c4   : > { %v1570_v58 = vpop.f32.mrb[42].mxu1 }
 0x2c5   : > { %v1577_v59 = vmax.f32 %v1568_v56, 0.0  ;;  %v3000_v60 = vpop.f32.mrb[43].mxu1 }
 0x2c7   : > { %v1592_v62 = vsel %vm425_vm10, %v1577_v59, 0.0 }
 0x2c8   : > { %1597 = vst [vmem:[#allocation4 + $0x28] sm:$0xff] %v1592_v62  ;;  %v1607_v2 = vld [vmem:[#allocation4 + $0x17] ss:$2 sm:$0xff]  ;;  %v1601_v55 = vld [vmem:[#allocation4 + $0x16] ss:$2 sm:$0xff] }
 0x2c9   : > { %v1619_v3 = vld [vmem:[#allocation4 + $0x19] ss:$2 sm:$0xff]  ;;  %v1623_v4 = vpack.c.bf16 %v1607_v2, %v1605_v61  ;;  %v1622_v6 = vpack.c.bf16 %v1601_v55, %v1599_v1  ;;  %v1613_v9 = vld [vmem:[#allocation4 + $0x18] ss:$2 sm:$0xff] }
 0x2ca   : > { %v1625_v5 = vpack.c.bf16 %v1619_v3, %v1617_v63  ;;  %v1624_v11 = vpack.c.bf16 %v1613_v9, %v1611_v7 }
 0x2cb   : > { %1925 = vmatprep.mubr.bf16.mxu0 %v1623_v4 }
 0x2cc   : > { %1973 = vmatprep.mubr.bf16.mxu1 %v1625_v5  ;;  %1926 = vmatmul.mubr.bf16.vlgmr.msra.gmra.mrb[12].mxu0 %v1622_v6  ;;  %v405_v5 = vadd.s32 16, %v3628_v46 }
 0x2cd   : > { %1974 = vmatmul.mubr.bf16.vlgmr.msra.gmra.mrb[44].mxu1 %v1624_v11  ;;  %2919 = vmatpush3.bf16.msra.mxu0 %v3112_v10 }
 0x2ce   : > { %3002 = vmatpush3.bf16.msra.mxu1 %v3111_v0  ;;  %2920 = vmatprep.subr.bf16.mxu0 %v3113_v20  ;;  %vm428_vm11 = vcmp.lt.s32.totalorder %v405_v5, 17 }
 0x2cf   : > { %3003 = vmatprep.subr.bf16.mxu1 %v3468_v8  ;;  %v1609_v12 = vld [vmem:[#allocation4 + $0x27] ss:$2 sm:$0xff]  ;;  %v1603_v14 = vld [vmem:[#allocation4 + $0x26] ss:$2 sm:$0xff] }
 0x2d0   : > { %v1621_v13 = vld [vmem:[#allocation4 + $0x29] ss:$2 sm:$0xff]  ;;  %v1627_v15 = vpack.c.bf16 %v1609_v12, %v1609_v12  ;;  %v1615_v17 = vld [vmem:[#allocation4 + $0x28] ss:$2 sm:$0xff]  ;;  %v1626_v18 = vpack.c.bf16 %v1603_v14, %v1603_v14 }
 0x2d1   : > { %v1629_v16 = vpack.c.bf16 %v1621_v13, %v1621_v13  ;;  %v1628_v19 = vpack.c.bf16 %v1615_v17, %v1615_v17  ;;  %2921 = vmatpush3.bf16.msra.mxu0 %v3115_v22  ;;  %v3134_v22 = vld [vmem:[%s3946_s9] ss:$8 sps:$4 sm:$0xff]  }
 0x2d2   : > { %1933 = vmatprep.mubr.bf16.mxu0 %v1627_v15  ;;  %3004 = vmatpush3.bf16.msra.mxu1 %v3114_v21 }
 0x2d3   : > { %1981 = vmatprep.mubr.bf16.mxu1 %v1629_v16  ;;  %3005 = vmatprep.subr.bf16.mxu1 %v3468_v8 }
 0x2d4   : > { %1934 = vmatmul.mubr.bf16.gmra.mrb[16].mxu0 %v1626_v18  ;;  %2922 = vmatprep.subr.bf16.mxu0 %v3116_v23  ;;  %v3139_v23 = vld [vmem:[%s3946_s9 + $0x14] ss:$8 sps:$4 sm:$0xff]  }
 0x2d5   : > { %1982 = vmatmul.mubr.bf16.gmra.mrb[48].mxu1 %v1628_v19  ;;  %2923 = vmatpush3.bf16.msra.mxu0 %v3118_v25  ;;  %v3142_v25 = vld [vmem:[%s3946_s9 + $0x24] ss:$8 sps:$4 sm:$0xff]  }
 0x2d6   : > { %3017 = vmatprep.mubr.msk.bf16.mxu1 %vm3196_vm2, %v3468_v8  ;;  %3006 = vmatpush3.bf16.msra.mxu1 %v3117_v24  ;;  %v3137_v24 = vld [vmem:[%s3946_s9 + $0x10] ss:$8 sps:$4 sm:$0xff]  }
 0x2d7   : > { %3007 = vmatprep.subr.bf16.mxu1 %v3468_v8  ;;  %2924 = vmatprep.subr.bf16.mxu0 %v3119_v26  ;;  %v3140_v26 = vld [vmem:[%s3946_s9 + $0x20] ss:$8 sps:$4 sm:$0xff]  }
 0x2d9   : > { %2925 = vmatpush3.bf16.msra.mxu0 %v3121_v28  ;;  %v3143_v28 = vld [vmem:[%s3946_s9 + $0x30] ss:$8 sps:$4 sm:$0xff]  }
 0x2da   : > { %3008 = vmatpush3.bf16.msra.mxu1 %v3120_v27  ;;  %2926 = vmatprep.subr.bf16.mxu0 %v3122_v29  ;;  %v3145_v27 = vld [vmem:[%s3946_s9 + $0x34] ss:$8 sps:$4 sm:$0xff]   ;;  %v3148_v29 = vld [vmem:[%s3946_s9 + $0x44] ss:$8 sps:$4 sm:$0xff]  }
 0x2db   : > { %3009 = vmatprep.subr.bf16.mxu1 %v3468_v8 }
 0x2dd   : > { %2927 = vmatpush3.bf16.msra.mxu0 %v3124_v31  ;;  %v3151_v31 = vld [vmem:[%s3946_s9 + $0x54] ss:$8 sps:$4 sm:$0xff]  }
 0x2de   : > { %3010 = vmatpush3.bf16.msra.mxu1 %v3123_v30  ;;  %2928 = vmatprep.subr.bf16.mxu0 %v3125_v32  ;;  %v3146_v30 = vld [vmem:[%s3946_s9 + $0x40] ss:$8 sps:$4 sm:$0xff]   ;;  %v3149_v32 = vld [vmem:[%s3946_s9 + $0x50] ss:$8 sps:$4 sm:$0xff]  }
 0x2df   : > { %3011 = vmatprep.subr.bf16.mxu1 %v3468_v8 }
 0x2e1   : > { %2929 = vmatpush3.bf16.msra.mxu0 %v3127_v34  ;;  %v3152_v34 = vld [vmem:[%s3946_s9 + $0x60] ss:$8 sps:$4 sm:$0xff]  }
 0x2e2   : > { %3012 = vmatpush3.bf16.msra.mxu1 %v3126_v33  ;;  %2930 = vmatprep.subr.bf16.mxu0 %v3128_v35  ;;  %v3154_v33 = vld [vmem:[%s3946_s9 + $0x64] ss:$8 sps:$4 sm:$0xff]   ;;  %v3157_v35 = vld [vmem:[%s3946_s9 + $0x74] ss:$8 sps:$4 sm:$0xff]  }
 0x2e3   : > { %3013 = vmatprep.subr.bf16.mxu1 %v3468_v8 }
 0x2e5   : > { %2931 = vmatpush3.bf16.msra.mxu0 %v3130_v37  ;;  %v3160_v37 = vld [vmem:[%s3946_s9 + $0x84] ss:$8 sps:$4 sm:$0xff]  }
 0x2e6   : > { %3014 = vmatpush3.bf16.msra.mxu1 %v3129_v36  ;;  %2932 = vmatprep.subr.bf16.mxu0 %v3131_v38  ;;  %v3155_v36 = vld [vmem:[%s3946_s9 + $0x70] ss:$8 sps:$4 sm:$0xff]   ;;  %v3158_v38 = vld [vmem:[%s3946_s9 + $0x80] ss:$8 sps:$4 sm:$0xff]  }
 0x2e7   : > { %3015 = vmatprep.subr.bf16.mxu1 %v3468_v8 }
 0x2e9   : > { %2933 = vmatpush3.bf16.msra.mxu0 %v3133_v40  ;;  %v3161_v40 = vld [vmem:[%s3946_s9 + $0x90] ss:$8 sps:$4 sm:$0xff]  }
 0x2ea   : > { %3016 = vmatpush3.bf16.msra.mxu1 %v3132_v39  ;;  %2520 = vmatprep.subr.bf16.mxu0 %v3136_v41  ;;  %v3163_v39 = vld [vmem:[%s3946_s9 + $0x94] ss:$8 sps:$4 sm:$0xff]   ;;  %v3166_v41 = vld [vmem:[%s3946_s9 + $0xa4] ss:$8 sps:$4 sm:$0xff]  }
 0x39f   : > { %v2878_v42 = vpop.f32.mrb[12].mxu0 }
 0x3a0   : > { %v2906_v43 = vpop.f32.mrb[44].mxu1  ;;  %v2879_v45 = vpop.f32.mrb[13].mxu0 }
 0x3a1   : > { %v2907_v8 = vpop.f32.mrb[45].mxu1  ;;  %v2880_v47 = vadd.f32 %v2879_v45, %v2878_v42  ;;  %v2881_v49 = vpop.f32.mrb[14].mxu0  ;;  %v3164_v42 = vld [vmem:[%s3946_s9 + $0xa0] ss:$8 sps:$4 sm:$0xff]   ;;  %v3172_v45 = vld [vmem:[%s3946_s9 + $0xc4] ss:$8 sps:$4 sm:$0xff]  }
 0x3a2   : > { %v2908_v48 = vadd.f32 %v2907_v8, %v2906_v43  ;;  %v2909_v50 = vpop.f32.mrb[46].mxu1  ;;  %v2882_v51 = vpop.f32.mrb[15].mxu0  ;;  %v3169_v43 = vld [vmem:[%s3946_s9 + $0xb4] ss:$8 sps:$4 sm:$0xff]   ;;  %v3170_v8 = vld [vmem:[%s3946_s9 + $0xc0] ss:$8 sps:$4 sm:$0xff]  }
 0x3a3   : > { %v2910_v52 = vpop.f32.mrb[47].mxu1  ;;  %v1928_v53 = vadd.f32 %v2880_v47, %v2682_v44  ;;  %v2883_v54 = vadd.f32 %v2882_v51, %v2881_v49  ;;  %v3175_v47 = vld [vmem:[%s3946_s9 + $0xd4] ss:$8 sps:$4 sm:$0xff]   ;;  %v3178_v49 = vld [vmem:[%s3946_s9 + $0xe4] ss:$8 sps:$4 sm:$0xff]  }
 0x3a4   : > { %v2911_v56 = vadd.f32 %v2910_v52, %v2909_v50  ;;  %v3176_v50 = vld [vmem:[%s3946_s9 + $0xe0] ss:$8 sps:$4 sm:$0xff]   ;;  %v3181_v51 = vld [vmem:[%s3946_s9 + $0xf4] ss:$8 sps:$4 sm:$0xff]   ;;  %v3179_v52 = vld [vmem:[%s3946_s9 + $0xf0] ss:$8 sps:$4 sm:$0xff]  }
 0x3a5   : > { %v1976_v57 = vadd.f32 %v2908_v48, %v1928_v53  ;;  %v1931_v58 = vadd.f32 %v2883_v54, %v2682_v44  ;;  %v3173_v48 = vld [vmem:[%s3946_s9 + $0xd0] ss:$8 sps:$4 sm:$0xff]  }
 0x3a7   : > { %v1989_v59 = vmax.f32 %v1976_v57, 0.0  ;;  %v1979_v60 = vadd.f32 %v2911_v56, %v1931_v58  ;;  %v2884_v61 = vpop.f32.mrb[16].mxu0  ;;  %v2715_v57 = vld [vmem:[%s3945_s8] ss:$0 sm:$0xff] }
 0x3a8   : > { %v2912_v62 = vpop.f32.mrb[48].mxu1  ;;  %v2885_v63 = vpop.f32.mrb[17].mxu0 }
 0x3a9   : > { %v2913_v1 = vpop.f32.mrb[49].mxu1  ;;  %2001 = vst [vmem:[#allocation5 + $0x8] sm:$0xff] %v1989_v59  ;;  %v1990_v0 = vmax.f32 %v1979_v60, 0.0  ;;  %v2886_v2 = vadd.f32 %v2885_v63, %v2884_v61  ;;  %v2887_v55 = vpop.f32.mrb[18].mxu0 }
 0x3aa   : > { %v2914_v3 = vadd.f32 %v2913_v1, %v2912_v62  ;;  %v2915_v4 = vpop.f32.mrb[50].mxu1  ;;  %v2888_v6 = vpop.f32.mrb[19].mxu0 }
 0x3ab   : > { %v2916_v7 = vpop.f32.mrb[51].mxu1  ;;  %2002 = vst [vmem:[#allocation5 + $0x10] sm:$0xff] %v1990_v0  ;;  %v1936_v9 = vadd.f32 %v2886_v2, %v2682_v44  ;;  %v3167_v44 = vld [vmem:[%s3946_s9 + $0xb0] ss:$8 sps:$4 sm:$0xff]   ;;  %v404_v2 = vadd.s32 8, %v3628_v46 }
 0x3ad   : > { %v1984_v10 = vadd.f32 %v2914_v3, %v1936_v9  ;;  %vm430_vm12 = vcmp.lt.s32.totalorder %v404_v2, 9 }
 0x3af   : > { %v1991_v11 = vmax.f32 %v1984_v10, 0.0 }
 0x3b1   : > { %v2000_v12 = vsel %vm428_vm11, %v1991_v11, 0.0 }
 0x3b2   : > { %2003 = vst [vmem:[#allocation5 + $0x18] sm:$0xff] %v2000_v12  ;;  %v2009_v13 = vld [vmem:[#allocation5 + $0x8] ss:$2 sm:$0xff]  ;;  %v2013_v14 = vld [vmem:[#allocation5 + $0x9] ss:$2 sm:$0xff] }
 0x3b3   : > { %v2005_v15 = vld [vmem:[#allocation5 + $0x7] ss:$2 sm:$0xff] }
 0x3b9   : > { %v2011_v16 = vld [vmem:[#allocation5 + $0x18] ss:$2 sm:$0xff]  ;;  %v2015_v17 = vld [vmem:[#allocation5 + $0x19] ss:$2 sm:$0xff] }
 0x3ba   : > { %v2007_v18 = vld [vmem:[#allocation5 + $0x17] ss:$2 sm:$0xff]  ;;  %v2017_v19 = vpack.c.bf16 %v2011_v16, %v2009_v13  ;;  %v2018_v20 = vpack.c.bf16 %v2015_v17, %v2013_v14  ;;  %v2352_v13 = vsub.s32 0, %v3628_v46 }
 0x3bb   : > { %v2016_v21 = vpack.c.bf16 %v2007_v18, %v2005_v15  ;;  %v2348_v14 = vld [vmem:[%s3947_s10] sm:$0x3]  ;;  %v2356_v15 = vsub.s32 1, %v3628_v46 }
 0x3bc   : > { %2250 = vmatprep.mubr.bf16.mxu0 %v2017_v19  ;;  %3018 = vmatmul.mubr.bf16.vlgmr.msra.gmra.mrb[52].mxu1 %v2018_v20  ;;  %v2353_v16 = vrot.slane %v2348_v14, %v2352_v13 }
 0x3bd   : > { %2251 = vmatmul.mubr.bf16.vlgmr.msra.gmra.mrb[20].mxu0 %v2016_v21  ;;  %v2357_v17 = vrot.slane %v2348_v14, %v2356_v15 }
 0x3be   : > { %2521 = vmatpush1.bf16.msra.mxu0 %v3134_v22 }
 0x3bf   : > { %2522 = vmatprep.subr.bf16.mxu0 %v3139_v23 }
 0x3c2   : > { %2523 = vmatpush1.bf16.msra.mxu0 %v3137_v24 }
 0x3c3   : > { %2524 = vmatprep.subr.bf16.mxu0 %v3142_v25 }
 0x3c6   : > { %2525 = vmatpush1.bf16.msra.mxu0 %v3140_v26 }
 0x3c7   : > { %2526 = vmatprep.subr.bf16.mxu0 %v3145_v27 }
 0x3ca   : > { %2527 = vmatpush1.bf16.msra.mxu0 %v3143_v28 }
 0x3cb   : > { %2528 = vmatprep.subr.bf16.mxu0 %v3148_v29 }
 0x3ce   : > { %2529 = vmatpush1.bf16.msra.mxu0 %v3146_v30 }
 0x3cf   : > { %2530 = vmatprep.subr.bf16.mxu0 %v3151_v31 }
 0x3d2   : > { %2531 = vmatpush1.bf16.msra.mxu0 %v3149_v32 }
 0x3d3   : > { %2532 = vmatprep.subr.bf16.mxu0 %v3154_v33 }
 0x3d6   : > { %2533 = vmatpush1.bf16.msra.mxu0 %v3152_v34 }
 0x3d7   : > { %2534 = vmatprep.subr.bf16.mxu0 %v3157_v35 }
 0x3da   : > { %2535 = vmatpush1.bf16.msra.mxu0 %v3155_v36 }
 0x3db   : > { %2536 = vmatprep.subr.bf16.mxu0 %v3160_v37 }
 0x3de   : > { %2537 = vmatpush1.bf16.msra.mxu0 %v3158_v38 }
 0x3df   : > { %2538 = vmatprep.subr.bf16.mxu0 %v3163_v39 }
 0x3e2   : > { %2539 = vmatpush1.bf16.msra.mxu0 %v3161_v40 }
 0x3e3   : > { %2540 = vmatprep.subr.bf16.mxu0 %v3166_v41 }
 0x3e6   : > { %2541 = vmatpush1.bf16.msra.mxu0 %v3164_v42 }
 0x3e7   : > { %2542 = vmatprep.subr.bf16.mxu0 %v3169_v43 }
 0x3ea   : > { %2543 = vmatpush1.bf16.msra.mxu0 %v3167_v44 }
 0x3eb   : > { %2544 = vmatprep.subr.bf16.mxu0 %v3172_v45 }
 0x3ee   : > { %2545 = vmatpush1.bf16.msra.mxu0 %v3170_v8 }
 0x3ef   : > { %2546 = vmatprep.subr.bf16.mxu0 %v3175_v47 }
 0x3f2   : > { %2547 = vmatpush1.bf16.msra.mxu0 %v3173_v48 }
 0x3f3   : > { %2548 = vmatprep.subr.bf16.mxu0 %v3178_v49 }
 0x3f6   : > { %2549 = vmatpush1.bf16.msra.mxu0 %v3176_v50 }
 0x3f7   : > { %2550 = vmatprep.subr.bf16.mxu0 %v3181_v51 }
 0x3fa   : > { %2551 = vmatpush1.bf16.msra.mxu0 %v3179_v52 }
 0x48f   : > { %v2293_v53 = vpop.f32.mrb[52].mxu1 }
 0x490   : > { %v2934_v54 = vpop.f32.mrb[20].mxu0  ;;  %v3019_v56 = vpop.f32.mrb[53].mxu1 }
 0x491   : > { %v2935_v58 = vpop.f32.mrb[21].mxu0  ;;  %v2296_v59 = vpop.f32.mrb[54].mxu1 }
 0x492   : > { %v2936_v60 = vadd.f32 %v2935_v58, %v2934_v54  ;;  %v2937_v61 = vpop.f32.mrb[22].mxu0  ;;  %v3020_v62 = vpop.f32.mrb[55].mxu1 }
 0x493   : > { %v2938_v63 = vpop.f32.mrb[23].mxu0 }
 0x494   : > { %v2253_v1 = vadd.f32 %v2936_v60, %v2715_v57  ;;  %v2939_v0 = vadd.f32 %v2938_v63, %v2937_v61 }
 0x496   : > { %v2294_v3 = vadd.f32 %v2293_v53, %v2253_v1  ;;  %v2256_v55 = vadd.f32 %v2939_v0, %v2715_v57 }
 0x498   : > { %v2300_v4 = vmax.f32 %v2294_v3, 0.0  ;;  %v2297_v5 = vadd.f32 %v2296_v59, %v2256_v55 }
 0x49a   : > { %2308 = vst [vmem:[#allocation6 + $0x8] sm:$0xff] %v2300_v4  ;;  %v2301_v6 = vmax.f32 %v2297_v5, 0.0 }
 0x49c   : > { %v2307_v7 = vsel %vm430_vm12, %v2301_v6, 0.0 }
 0x49d   : > { %2309 = vst [vmem:[#allocation6 + $0x10] sm:$0xff] %v2307_v7 }
 0x4a4   : > { %v2313_v9 = vld [vmem:[#allocation6 + $0x8] ss:$2 sm:$0xff]  ;;  %v2311_v10 = vld [vmem:[#allocation6 + $0x7] ss:$2 sm:$0xff] }
 0x4a5   : > { %v2315_v11 = vpack.c.bf16 %v2313_v9, %v2313_v9  ;;  %v2314_v12 = vpack.c.bf16 %v2311_v10, %v2311_v10 }
 0x4a7   : > { %2552 = vmatprep.mubr.bf16.mxu0 %v2315_v11 }
 0x4a8   : > { %2553 = vmatmul.mubr.bf16.vlgmr.msra.gmra.mrb[24].mxu0 %v2314_v12 }
 0x57b   : > { %v2554_v18 = vpop.f32.mrb[24].mxu0 }
 0x57c   : > { %v2555_v19 = vadd.f32 %v2554_v18, %v2353_v16  ;;  %v2556_v20 = vpop.f32.mrb[25].mxu0 }
 0x57d   : > { %v2557_v21 = vadd.f32 %v2556_v20, %v2357_v17  ;;  %v2558_v22 = vpop.f32.mrb[26].mxu0 }
 0x57e   : > { %v2561_v23 = vmax.f32 %v2555_v19, 0.0  ;;  %v2559_v24 = vpop.f32.mrb[27].mxu0 }
 0x57f   : > { %v2562_v25 = vmax.f32 %v2557_v21, 0.0 }
 0x580   : > { %v2565_v26 = vsel %vm431_vm13, %v2561_v23, 0.0 }
 0x581   : > { %2567 = vst [vmem:[%s386_s30] sm:$0xff] %v2565_v26  ;;  %v2566_v27 = vsel %vm431_vm13, %v2562_v25, 0.0 }
 0x582   : > { %2568 = vst [vmem:[%s386_s30 + $0x8] sm:$0xff] %v2566_v27 }
 0x583 PF: > { %s21_s17 = sadd.s32 1, %s3189_s17  }
 0x584   : > { %p18_p4 = scmp.ge.s32.totalorder %s21_s17, 4  }
 0x586   :  { %20 = sbr.rel (!%p18_p4) target bundleno = 1 (0x1), region = 193 }

</bundles_post_ra>
